<compile_context>
chip_gen: v5e
topology: v5e:2x2
jax: 0.10.0
libtpu: 0.0.40
codegen_flags: <defaults>
</compile_context>

<pallas_src>
import functools
import math

import jax
import jax.numpy as jnp
import numpy as np
from jax.experimental import pallas as pl
from jax.experimental.pallas import tpu as pltpu

LN_EPS = 1e-5


def _round_up(x, m):
    return (x + m - 1) // m * m


def _layernorm(v, w, b):
    mu = jnp.mean(v, axis=-1, keepdims=True)
    d = v - mu
    var = jnp.mean(d * d, axis=-1, keepdims=True)
    return d * jax.lax.rsqrt(var + LN_EPS) * w + b


# --------------------------------------------------------------------------- #
# Kernel
# --------------------------------------------------------------------------- #
def rab_kernel(x_ref, ln1w_ref, ln1b_ref, wqkv_ref, bqkv_ref, wo_ref, bo_ref,
               ln2w_ref, ln2b_ref, wfc_ref, bfc_ref, wpj_ref, bpj_ref,
               o_ref, *, num_heads, seq_len):
    """One (B_tile, L_pad, E) batch-tile per grid step."""
    B, Lp, E = x_ref.shape
    H = num_heads
    Dh = E // H
    M = B * Lp
    bf16 = jnp.bfloat16

    # Flatten batch*seq so every projection / MLP matmul has a tall M dim.
    x = x_ref[...].astype(jnp.float32).reshape(M, E)

    # ---- ln_1 + multi-head self-attention ----
    xn = _layernorm(x, ln1w_ref[...], ln1b_ref[...])
    # 1/sqrt(Dh) is already folded into the Q columns of wqkv/bqkv (wrapper),
    # so no (H, L, L)-sized scale multiply happens here.
    qkv = jnp.dot(xn.astype(bf16), wqkv_ref[...],
                  preferred_element_type=jnp.float32) + bqkv_ref[...]     # (M, 3E) f32

    def heads(t):  # (M, E) f32 -> (B*H, Lp, Dh) bf16; cast first to halve relayout
        t = t.astype(bf16).reshape(B, Lp, H, Dh)
        return jnp.transpose(t, (0, 2, 1, 3)).reshape(B * H, Lp, Dh)

    qh = heads(qkv[:, :E])
    kh = heads(qkv[:, E:2 * E])
    vh = heads(qkv[:, 2 * E:])

    # Leading fused (batch*heads) dim + minor contraction dim -> clean dot_general.
    s = jnp.einsum("zqd,zkd->zqk", qh, kh,
                   preferred_element_type=jnp.float32)                    # (B*H, Lp, Lp)
    if seq_len != Lp:
        key_pos = jax.lax.broadcasted_iota(jnp.int32, (1, 1, Lp), 2)
        s = jnp.where(key_pos < seq_len, s, -1e9)          # mask padded key slots
    s = s - jnp.max(s, axis=-1, keepdims=True)
    p = jnp.exp(s)
    # divide -> EUP reciprocal (separate issue slot) + VPU multiply
    p = p * pl.reciprocal(jnp.sum(p, axis=-1, keepdims=True), approx=True)
    ctx = jnp.einsum("zqk,zkd->zqd", p.astype(bf16), vh,
                     preferred_element_type=jnp.float32)                  # (B*H, Lp, Dh)
    ctx = jnp.transpose(ctx.astype(bf16).reshape(B, H, Lp, Dh),
                        (0, 2, 1, 3)).reshape(M, E)
    attn_out = jnp.dot(ctx, wo_ref[...],
                       preferred_element_type=jnp.float32) + bo_ref[...]
    h1 = x + attn_out                                                     # f32 residual

    # ---- ln_2 + MLP (c_fc -> QuickGELU -> c_proj) ----
    hn = _layernorm(h1, ln2w_ref[...], ln2b_ref[...])
    ff = jnp.dot(hn.astype(bf16), wfc_ref[...],
                 preferred_element_type=jnp.float32) + bfc_ref[...]       # (M, 4E) f32
    ffb = ff.astype(bf16)
    ffb = ffb * jax.nn.sigmoid(1.702 * ffb)          # QuickGELU in bf16 (widest tensor)
    out = jnp.dot(ffb, wpj_ref[...],
                  preferred_element_type=jnp.float32) + bpj_ref[...]      # (M, E) f32

    o_ref[...] = (h1 + out).reshape(B, Lp, E).astype(o_ref.dtype)


# --------------------------------------------------------------------------- #
# One-time probes / budgets
# --------------------------------------------------------------------------- #
_BUFFERED_SUPPORT = None


def _buffered_weights_supported():
    """Probe ONCE whether this JAX build accepts pipeline_mode=pl.Buffered(1)."""
    global _BUFFERED_SUPPORT
    if _BUFFERED_SUPPORT is None:
        try:
            def _copy(x_ref, o_ref):
                o_ref[...] = x_ref[...]
            f = pl.pallas_call(
                _copy,
                out_shape=jax.ShapeDtypeStruct((8, 128), jnp.float32),
                grid=(1,),
                in_specs=[pl.BlockSpec((8, 128), lambda i: (0, 0),
                                       pipeline_mode=pl.Buffered(1))],
                out_specs=pl.BlockSpec((8, 128), lambda i: (0, 0)))
            r = jax.block_until_ready(f(jnp.ones((8, 128), jnp.float32)))
            _BUFFERED_SUPPORT = bool(jnp.all(r == 1.0))
        except Exception:   # decided once here, never per call
            _BUFFERED_SUPPORT = False
    return _BUFFERED_SUPPORT


def _vmem_limit_bytes():
    cap = 64 * 2 ** 20              # conservative default (v7x per-TC physical VMEM)
    try:
        cap = int(getattr(pltpu.get_tpu_info(), "vmem_capacity_bytes", cap))
    except Exception:
        pass
    # Leave headroom for Mosaic internal scratch; cap at 112 MiB on v5e/v6e.
    return int(max(32 * 2 ** 20, min(cap - 8 * 2 ** 20, 112 * 2 ** 20)))


def _estimate_vmem_bytes(bt, Lp, E, H, weights_single_buffered):
    """Conservative flat-sum of resident weights + per-step temporaries."""
    M = bt * Lp
    w = 12 * E * E * 2 + 16 * E * 4            # bf16 matmul weights + biases / LN
    if not weights_single_buffered:
        w *= 2                                  # double-buffered weight path
    a = 0
    a += 2 * 2 * bt * Lp * E * 4                # x-in / out blocks (double-buffered, f32)
    a += M * 3 * E * 4                          # qkv f32
    a += 3 * M * E * 2                          # q/k/v bf16 head views
    a += 3 * bt * H * Lp * Lp * 4               # scores / exp (f32) + slack
    a += bt * H * Lp * Lp * 2                   # probs bf16
    a += 3 * M * E * 4                          # ctx / attn_out / h1 f32
    a += M * 4 * E * 4 + M * 4 * E * 2          # ff f32 + bf16
    return w + a + (2 << 20)


def _choose_batch_tile(N, Lp, E, H, vmem_budget, weights_single_buffered):
    bt = 1
    for cand in range(1, N + 1):
        if _estimate_vmem_bytes(cand, Lp, E, H, weights_single_buffered) > vmem_budget:
            break
        bt = cand
        if cand * Lp >= 512:        # M already fills the MXU nicely
            break
    # Prefer a divisor of N (avoids padded-batch work) if it costs < half the tile.
    for cand in range(bt, 0, -1):
        if N % cand == 0:
            if 2 * cand >= bt:
                return cand
            break
    return bt


# --------------------------------------------------------------------------- #
# Wrapper
# --------------------------------------------------------------------------- #
def _pack_params(params, num_heads):
    """One-time preprocessing: transpose, fold 1/sqrt(Dh) into Q, cast to bf16."""
    f32, bf16 = jnp.float32, jnp.bfloat16
    E = params["ln1_w"].shape[0]
    Dh = E // num_heads
    scale = 1.0 / math.sqrt(Dh)
    col_scale = jnp.concatenate([jnp.full((E,), scale, f32), jnp.ones((2 * E,), f32)])
    wqkv = (params["in_proj_w"].astype(f32).T * col_scale[None, :]).astype(bf16)
    bqkv = (params["in_proj_b"].astype(f32) * col_scale).reshape(1, 3 * E)
    return (
        params["ln1_w"].astype(f32).reshape(1, E),
        params["ln1_b"].astype(f32).reshape(1, E),
        wqkv,                                                    # (E, 3E) bf16
        bqkv,                                                    # (1, 3E) f32
        params["out_proj_w"].astype(f32).T.astype(bf16),         # (E, E)  bf16
        params["out_proj_b"].astype(f32).reshape(1, E),
        params["ln2_w"].astype(f32).reshape(1, E),
        params["ln2_b"].astype(f32).reshape(1, E),
        params["c_fc_w"].astype(f32).T.astype(bf16),             # (E, 4E) bf16
        params["c_fc_b"].astype(f32).reshape(1, 4 * E),
        params["c_proj_w"].astype(f32).T.astype(bf16),           # (4E, E) bf16
        params["c_proj_b"].astype(f32).reshape(1, E),
    )


def _weight_spec(shape, mode):
    index_map = lambda b, _nd=len(shape): (0,) * _nd
    if mode is None:
        return pl.BlockSpec(shape, index_map)
    return pl.BlockSpec(shape, index_map, pipeline_mode=mode)


@functools.partial(jax.jit, static_argnames=("num_heads", "buffered", "vmem_limit"))
def _apply(x, packed, *, num_heads, buffered, vmem_limit):
    L, N, E = x.shape
    H = num_heads

    # Sublane-align the sequence dim (padded keys masked in softmax).
    Lp = _round_up(L, 8)
    bt = _choose_batch_tile(N, Lp, E, H, int(vmem_limit * 0.85), buffered)
    N_pad = _round_up(N, bt)

    # TODO(synk): run the surrounding model batch-major to drop these transposes.
    xb = jnp.transpose(x, (1, 0, 2))                             # (N, L, E)
    if (N_pad, Lp) != (N, L):
        xb = jnp.pad(xb, ((0, N_pad - N), (0, Lp - L), (0, 0)))

    mode = pl.Buffered(1) if buffered else None                  # weights resident once
    in_specs = [pl.BlockSpec((bt, Lp, E), lambda b: (b, 0, 0))]
    in_specs += [_weight_spec(w.shape, mode) for w in packed]

    flops = N_pad * (24 * Lp * E * E + 4 * Lp * Lp * E)
    transc = N_pad * (H * Lp * Lp + 4 * Lp * E + 2 * Lp)
    bytes_acc = 2 * N_pad * Lp * E * 4 + 12 * E * E * 2 + 16 * E * 4

    out = pl.pallas_call(
        functools.partial(rab_kernel, num_heads=H, seq_len=L),
        out_shape=jax.ShapeDtypeStruct((N_pad, Lp, E), x.dtype),
        grid=(N_pad // bt,),
        in_specs=in_specs,
        out_specs=pl.BlockSpec((bt, Lp, E), lambda b: (b, 0, 0)),
        compiler_params=pltpu.CompilerParams(
            dimension_semantics=("parallel",),
            vmem_limit_bytes=int(vmem_limit)),
        cost_estimate=pl.CostEstimate(flops=int(flops),
                                      transcendentals=int(transc),
                                      bytes_accessed=int(bytes_acc)),
    )(xb, *packed)

    if (N_pad, Lp) != (N, L):
        out = out[:N, :L]
    return jnp.transpose(out, (1, 0, 2))                         # back to (L, N, E)


def make_residual_attention_block(params, num_heads):
    """Preprocess weights once; return a jit-cached apply(x) for x of shape (L, N, E)."""
    packed = _pack_params(params, num_heads)
    buffered = _buffered_weights_supported()
    vmem_limit = _vmem_limit_bytes()

    def apply(x):
        return _apply(x, packed, num_heads=num_heads,
                      buffered=buffered, vmem_limit=vmem_limit)

    return apply


# --------------------------------------------------------------------------- #
# Pure-JAX f32 reference (PyTorch ResidualAttentionBlock semantics)
# --------------------------------------------------------------------------- #
def reference_block(x, params, num_heads):
    L, N, E = x.shape
    Dh = E // num_heads

    def ln(v, w, b):
        mu = jnp.mean(v, axis=-1, keepdims=True)
        var = jnp.mean((v - mu) ** 2, axis=-1, keepdims=True)
        return (v - mu) / jnp.sqrt(var + LN_EPS) * w + b

    xn = ln(x, params["ln1_w"], params["ln1_b"])
    qkv = xn @ params["in_proj_w"].T + params["in_proj_b"]       # (L, N, 3E)
    q, k, v = qkv[..., :E], qkv[..., E:2 * E], qkv[..., 2 * E:]

    def split(t):  # (L, N, E) -> (N, H, L, Dh)
        return jnp.transpose(t.reshape(L, N, num_heads, Dh), (1, 2, 0, 3))

    qh, kh, vh = split(q), split(k), split(v)
    s = jnp.einsum("nhld,nhmd->nhlm", qh, kh) / jnp.sqrt(Dh)
    p = jax.nn.softmax(s, axis=-1)
    ctx = jnp.einsum("nhlm,nhmd->nhld", p, vh)                   # (N, H, L, Dh)
    ctx = jnp.transpose(ctx, (2, 0, 1, 3)).reshape(L, N, E)
    attn_out = ctx @ params["out_proj_w"].T + params["out_proj_b"]

    h1 = x + attn_out
    hn = ln(h1, params["ln2_w"], params["ln2_b"])
    ff = hn @ params["c_fc_w"].T + params["c_fc_b"]
    ff = ff * jax.nn.sigmoid(1.702 * ff)
    ff = ff @ params["c_proj_w"].T + params["c_proj_b"]
    return h1 + ff


def init_params(key, hidden_dim):
    E = hidden_dim
    ks = jax.random.split(key, 8)
    s = 0.05
    return {
        "ln1_w": jnp.ones((E,), jnp.float32),
        "ln1_b": jnp.zeros((E,), jnp.float32),
        "in_proj_w": s * jax.random.normal(ks[0], (3 * E, E), jnp.float32),
        "in_proj_b": s * jax.random.normal(ks[1], (3 * E,), jnp.float32),
        "out_proj_w": s * jax.random.normal(ks[2], (E, E), jnp.float32),
        "out_proj_b": s * jax.random.normal(ks[3], (E,), jnp.float32),
        "ln2_w": jnp.ones((E,), jnp.float32),
        "ln2_b": jnp.zeros((E,), jnp.float32),
        "c_fc_w": s * jax.random.normal(ks[4], (4 * E, E), jnp.float32),
        "c_fc_b": s * jax.random.normal(ks[5], (4 * E,), jnp.float32),
        "c_proj_w": s * jax.random.normal(ks[6], (E, 4 * E), jnp.float32),
        "c_proj_b": s * jax.random.normal(ks[7], (E,), jnp.float32),
    }


if __name__ == "__main__":
    L, N, E, H = 8, 2, 32, 4   # seq=8, batch=2, hidden=32, 4 heads

    key = jax.random.PRNGKey(0)
    kx, kp = jax.random.split(key)
    x = jax.random.normal(kx, (L, N, E), jnp.float32)
    params = init_params(kp, E)

    block = make_residual_attention_block(params, H)
    out = jax.block_until_ready(block(x))

    ref = jax.block_until_ready(reference_block(x, params, H))
    # bf16 matmuls / bf16 QuickGELU / approx softmax reciprocal vs pure-f32 ref.
    np.testing.assert_allclose(np.asarray(out), np.asarray(ref),
                               rtol=2e-2, atol=2e-2)

    print("KERNEL_OK")
</pallas_src>

<mosaic_0001>
module attributes {stable_mosaic.version = 11 : i64} {
  func.func @_copy(%arg0: i32, %arg1: memref<8x128xf32, #tpu.memory_space<vmem>>, %arg2: memref<8x128xf32, #tpu.memory_space<vmem>>) attributes {dimension_semantics = [#tpu.dimension_semantics<arbitrary>], iteration_bounds = array<i64: 1>, scalar_prefetch = 0 : i64, scratch_operands = 0 : i64, tpu.core_type = #tpu.core_type<tc>, window_params = [{pipeline_mode = #tpu.pipeline_mode<synchronous>, transform_indices = @transform_0, window_bounds = array<i64: 8, 128>}, {pipeline_mode = #tpu.pipeline_mode<synchronous>, transform_indices = @transform_1, window_bounds = array<i64: 8, 128>}]} {
    %c0 = arith.constant 0 : index
    %c0_0 = arith.constant 0 : index
    %0 = vector.load %arg1[%c0, %c0_0] : memref<8x128xf32, #tpu.memory_space<vmem>>, vector<8x128xf32>
    %c0_1 = arith.constant 0 : index
    %c0_2 = arith.constant 0 : index
    %1 = vector.load %arg2[%c0_1, %c0_2] : memref<8x128xf32, #tpu.memory_space<vmem>>, vector<8x128xf32>
    tpu.vector_store %arg2[%c0_1, %c0_2], %0 {strides = array<i32>} : memref<8x128xf32, #tpu.memory_space<vmem>>, vector<8x128xf32>,
    return
  }
  func.func @transform_0(%arg0: i32) -> (i32, i32) {
    %c0_i32 = arith.constant 0 : i32
    %c0_i32_0 = arith.constant 0 : i32
    %c0_i32_1 = arith.constant 0 : i32
    return %c0_i32, %c0_i32_0 : i32, i32
  }
  func.func @transform_1(%arg0: i32) -> (i32, i32) {
    %c0_i32 = arith.constant 0 : i32
    %c0_i32_0 = arith.constant 0 : i32
    %c0_i32_1 = arith.constant 0 : i32
    return %c0_i32, %c0_i32_0 : i32, i32
  }
}

module attributes {stable_mosaic.version = 11 : i64} {
  func.func @rab_kernel(%arg0: i32, %arg1: memref<2x8x32xf32, #tpu.memory_space<vmem>>, %arg2: memref<1x32xf32, #tpu.memory_space<vmem>>, %arg3: memref<1x32xf32, #tpu.memory_space<vmem>>, %arg4: memref<32x96xbf16, #tpu.memory_space<vmem>>, %arg5: memref<1x96xf32, #tpu.memory_space<vmem>>, %arg6: memref<32x32xbf16, #tpu.memory_space<vmem>>, %arg7: memref<1x32xf32, #tpu.memory_space<vmem>>, %arg8: memref<1x32xf32, #tpu.memory_space<vmem>>, %arg9: memref<1x32xf32, #tpu.memory_space<vmem>>, %arg10: memref<32x128xbf16, #tpu.memory_space<vmem>>, %arg11: memref<1x128xf32, #tpu.memory_space<vmem>>, %arg12: memref<128x32xbf16, #tpu.memory_space<vmem>>, %arg13: memref<1x32xf32, #tpu.memory_space<vmem>>, %arg14: memref<2x8x32xf32, #tpu.memory_space<vmem>>) attributes {dimension_semantics = [#tpu.dimension_semantics<parallel>], iteration_bounds = array<i64: 1>, scalar_prefetch = 0 : i64, scratch_operands = 0 : i64, tpu.core_type = #tpu.core_type<tc>, window_params = [{transform_indices = @transform_0, window_bounds = array<i64: 2, 8, 32>}, {pipeline_mode = #tpu.pipeline_mode<synchronous>, transform_indices = @transform_1, window_bounds = array<i64: 1, 32>}, {pipeline_mode = #tpu.pipeline_mode<synchronous>, transform_indices = @transform_2, window_bounds = array<i64: 1, 32>}, {pipeline_mode = #tpu.pipeline_mode<synchronous>, transform_indices = @transform_3, window_bounds = array<i64: 32, 96>}, {pipeline_mode = #tpu.pipeline_mode<synchronous>, transform_indices = @transform_4, window_bounds = array<i64: 1, 96>}, {pipeline_mode = #tpu.pipeline_mode<synchronous>, transform_indices = @transform_5, window_bounds = array<i64: 32, 32>}, {pipeline_mode = #tpu.pipeline_mode<synchronous>, transform_indices = @transform_6, window_bounds = array<i64: 1, 32>}, {pipeline_mode = #tpu.pipeline_mode<synchronous>, transform_indices = @transform_7, window_bounds = array<i64: 1, 32>}, {pipeline_mode = #tpu.pipeline_mode<synchronous>, transform_indices = @transform_8, window_bounds = array<i64: 1, 32>}, {pipeline_mode = #tpu.pipeline_mode<synchronous>, transform_indices = @transform_9, window_bounds = array<i64: 32, 128>}, {pipeline_mode = #tpu.pipeline_mode<synchronous>, transform_indices = @transform_10, window_bounds = array<i64: 1, 128>}, {pipeline_mode = #tpu.pipeline_mode<synchronous>, transform_indices = @transform_11, window_bounds = array<i64: 128, 32>}, {pipeline_mode = #tpu.pipeline_mode<synchronous>, transform_indices = @transform_12, window_bounds = array<i64: 1, 32>}, {transform_indices = @transform_13, window_bounds = array<i64: 2, 8, 32>}]} {
    %c0 = arith.constant 0 : index
    %c0_0 = arith.constant 0 : index
    %c0_1 = arith.constant 0 : index
    %0 = vector.load %arg1[%c0, %c0_0, %c0_1] : memref<2x8x32xf32, #tpu.memory_space<vmem>>, vector<2x8x32xf32>
    %1 = vector.shape_cast %0 : vector<2x8x32xf32> to vector<16x32xf32>
    %c0_2 = arith.constant 0 : index
    %c0_3 = arith.constant 0 : index
    %2 = vector.load %arg2[%c0_2, %c0_3] : memref<1x32xf32, #tpu.memory_space<vmem>>, vector<1x32xf32>
    %c0_4 = arith.constant 0 : index
    %c0_5 = arith.constant 0 : index
    %3 = vector.load %arg3[%c0_4, %c0_5] : memref<1x32xf32, #tpu.memory_space<vmem>>, vector<1x32xf32>
    %cst = arith.constant dense<0.000000e+00> : vector<16xf32>
    %4 = vector.multi_reduction <add>, %1, %cst [1] : vector<16x32xf32> to vector<16xf32>
    %5 = vector.shape_cast %4 : vector<16xf32> to vector<16x1xf32>
    %cst_6 = arith.constant 3.200000e+01 : f32
    %6 = vector.broadcast %cst_6 : f32 to vector<16x1xf32>
    %7 = arith.divf %5, %6 : vector<16x1xf32>
    %8 = vector.broadcast %7 : vector<16x1xf32> to vector<16x32xf32>
    %9 = arith.subf %1, %8 : vector<16x32xf32>
    %10 = arith.mulf %9, %9 : vector<16x32xf32>
    %cst_7 = arith.constant dense<0.000000e+00> : vector<16xf32>
    %11 = vector.multi_reduction <add>, %10, %cst_7 [1] : vector<16x32xf32> to vector<16xf32>
    %12 = vector.shape_cast %11 : vector<16xf32> to vector<16x1xf32>
    %cst_8 = arith.constant 3.200000e+01 : f32
    %13 = vector.broadcast %cst_8 : f32 to vector<16x1xf32>
    %14 = arith.divf %12, %13 : vector<16x1xf32>
    %cst_9 = arith.constant 9.99999974E-6 : f32
    %15 = vector.broadcast %cst_9 : f32 to vector<16x1xf32>
    %16 = arith.addf %14, %15 : vector<16x1xf32>
    %17 = math.rsqrt %16 : vector<16x1xf32>
    %18 = vector.broadcast %17 : vector<16x1xf32> to vector<16x32xf32>
    %19 = arith.mulf %9, %18 : vector<16x32xf32>
    %20 = vector.broadcast %2 : vector<1x32xf32> to vector<16x32xf32>
    %21 = arith.mulf %19, %20 : vector<16x32xf32>
    %22 = vector.broadcast %3 : vector<1x32xf32> to vector<16x32xf32>
    %23 = arith.addf %21, %22 : vector<16x32xf32>
    %24 = arith.truncf %23 : vector<16x32xf32> to vector<16x32xbf16>
    %c0_10 = arith.constant 0 : index
    %c0_11 = arith.constant 0 : index
    %25 = vector.load %arg4[%c0_10, %c0_11] : memref<32x96xbf16, #tpu.memory_space<vmem>>, vector<32x96xbf16>
    %cst_12 = arith.constant dense<0.000000e+00> : vector<16x96xf32>
    %26 = tpu.matmul %24, %25, %cst_12 {dimension_numbers = #tpu.dot_dimension_numbers<[1], [0], [0], [1], [0, 0, 1, 1], [], []>} : vector<16x32xbf16>, vector<32x96xbf16>, vector<16x96xf32> -> vector<16x96xf32>
    %c0_13 = arith.constant 0 : index
    %c0_14 = arith.constant 0 : index
    %27 = vector.load %arg5[%c0_13, %c0_14] : memref<1x96xf32, #tpu.memory_space<vmem>>, vector<1x96xf32>
    %28 = vector.broadcast %27 : vector<1x96xf32> to vector<16x96xf32>
    %29 = arith.addf %26, %28 : vector<16x96xf32>
    %30 = vector.extract_strided_slice %29 {offsets = [0, 0], sizes = [16, 32], strides = [1, 1]} : vector<16x96xf32> to vector<16x32xf32>
    %31 = arith.truncf %30 : vector<16x32xf32> to vector<16x32xbf16>
    %32 = vector.shape_cast %31 : vector<16x32xbf16> to vector<2x8x4x8xbf16>
    %33 = tpu.transpose %32, [0, 2, 1, 3] : vector<2x8x4x8xbf16> -> vector<2x4x8x8xbf16>
    %34 = vector.shape_cast %33 : vector<2x4x8x8xbf16> to vector<8x8x8xbf16>
    %35 = vector.extract_strided_slice %29 {offsets = [0, 32], sizes = [16, 32], strides = [1, 1]} : vector<16x96xf32> to vector<16x32xf32>
    %36 = arith.truncf %35 : vector<16x32xf32> to vector<16x32xbf16>
    %37 = vector.shape_cast %36 : vector<16x32xbf16> to vector<2x8x4x8xbf16>
    %38 = tpu.transpose %37, [0, 2, 1, 3] : vector<2x8x4x8xbf16> -> vector<2x4x8x8xbf16>
    %39 = vector.shape_cast %38 : vector<2x4x8x8xbf16> to vector<8x8x8xbf16>
    %40 = vector.extract_strided_slice %29 {offsets = [0, 64], sizes = [16, 32], strides = [1, 1]} : vector<16x96xf32> to vector<16x32xf32>
    %41 = arith.truncf %40 : vector<16x32xf32> to vector<16x32xbf16>
    %42 = vector.shape_cast %41 : vector<16x32xbf16> to vector<2x8x4x8xbf16>
    %43 = tpu.transpose %42, [0, 2, 1, 3] : vector<2x8x4x8xbf16> -> vector<2x4x8x8xbf16>
    %44 = vector.shape_cast %43 : vector<2x4x8x8xbf16> to vector<8x8x8xbf16>
    "tpu.trace_start"() <{level = 10 : i32, message = "zqd,zkd->zqk"}> : () -> ()
    %cst_15 = arith.constant dense<0.000000e+00> : vector<8x8x8xf32>
    %45 = tpu.matmul %34, %39, %cst_15 {dimension_numbers = #tpu.dot_dimension_numbers<[2], [2], [1], [1], [0, 0, 0, 1, 1, 1], [0], [0]>} : vector<8x8x8xbf16>, vector<8x8x8xbf16>, vector<8x8x8xf32> -> vector<8x8x8xf32>
    "tpu.trace_stop"() : () -> ()
    %cst_16 = arith.constant dense<0xFF800000> : vector<8x8xf32>
    %46 = vector.multi_reduction <maximumf>, %45, %cst_16 [2] : vector<8x8x8xf32> to vector<8x8xf32>
    %47 = vector.shape_cast %46 : vector<8x8xf32> to vector<8x8x1xf32>
    %48 = vector.broadcast %47 : vector<8x8x1xf32> to vector<8x8x8xf32>
    %49 = arith.subf %45, %48 : vector<8x8x8xf32>
    %50 = math.exp %49 : vector<8x8x8xf32>
    %cst_17 = arith.constant dense<0.000000e+00> : vector<8x8xf32>
    %51 = vector.multi_reduction <add>, %50, %cst_17 [2] : vector<8x8x8xf32> to vector<8x8xf32>
    %52 = vector.shape_cast %51 : vector<8x8xf32> to vector<8x8x1xf32>
    %53 = tpu.reciprocal %52 {approx = true} : vector<8x8x1xf32> -> vector<8x8x1xf32>
    %54 = vector.broadcast %53 : vector<8x8x1xf32> to vector<8x8x8xf32>
    %55 = arith.mulf %50, %54 : vector<8x8x8xf32>
    %56 = arith.truncf %55 : vector<8x8x8xf32> to vector<8x8x8xbf16>
    "tpu.trace_start"() <{level = 10 : i32, message = "zqk,zkd->zqd"}> : () -> ()
    %cst_18 = arith.constant dense<0.000000e+00> : vector<8x8x8xf32>
    %57 = tpu.matmul %56, %44, %cst_18 {dimension_numbers = #tpu.dot_dimension_numbers<[2], [1], [1], [2], [0, 0, 0, 1, 1, 2], [0], [0]>} : vector<8x8x8xbf16>, vector<8x8x8xbf16>, vector<8x8x8xf32> -> vector<8x8x8xf32>
    "tpu.trace_stop"() : () -> ()
    %58 = arith.truncf %57 : vector<8x8x8xf32> to vector<8x8x8xbf16>
    %59 = vector.shape_cast %58 : vector<8x8x8xbf16> to vector<2x4x8x8xbf16>
    %60 = tpu.transpose %59, [0, 2, 1, 3] : vector<2x4x8x8xbf16> -> vector<2x8x4x8xbf16>
    %61 = vector.shape_cast %60 : vector<2x8x4x8xbf16> to vector<16x32xbf16>
    %c0_19 = arith.constant 0 : index
    %c0_20 = arith.constant 0 : index
    %62 = vector.load %arg6[%c0_19, %c0_20] : memref<32x32xbf16, #tpu.memory_space<vmem>>, vector<32x32xbf16>
    %cst_21 = arith.constant dense<0.000000e+00> : vector<16x32xf32>
    %63 = tpu.matmul %61, %62, %cst_21 {dimension_numbers = #tpu.dot_dimension_numbers<[1], [0], [0], [1], [0, 0, 1, 1], [], []>} : vector<16x32xbf16>, vector<32x32xbf16>, vector<16x32xf32> -> vector<16x32xf32>
    %c0_22 = arith.constant 0 : index
    %c0_23 = arith.constant 0 : index
    %64 = vector.load %arg7[%c0_22, %c0_23] : memref<1x32xf32, #tpu.memory_space<vmem>>, vector<1x32xf32>
    %65 = vector.broadcast %64 : vector<1x32xf32> to vector<16x32xf32>
    %66 = arith.addf %63, %65 : vector<16x32xf32>
    %67 = arith.addf %1, %66 : vector<16x32xf32>
    %c0_24 = arith.constant 0 : index
    %c0_25 = arith.constant 0 : index
    %68 = vector.load %arg8[%c0_24, %c0_25] : memref<1x32xf32, #tpu.memory_space<vmem>>, vector<1x32xf32>
    %c0_26 = arith.constant 0 : index
    %c0_27 = arith.constant 0 : index
    %69 = vector.load %arg9[%c0_26, %c0_27] : memref<1x32xf32, #tpu.memory_space<vmem>>, vector<1x32xf32>
    %cst_28 = arith.constant dense<0.000000e+00> : vector<16xf32>
    %70 = vector.multi_reduction <add>, %67, %cst_28 [1] : vector<16x32xf32> to vector<16xf32>
    %71 = vector.shape_cast %70 : vector<16xf32> to vector<16x1xf32>
    %cst_29 = arith.constant 3.200000e+01 : f32
    %72 = vector.broadcast %cst_29 : f32 to vector<16x1xf32>
    %73 = arith.divf %71, %72 : vector<16x1xf32>
    %74 = vector.broadcast %73 : vector<16x1xf32> to vector<16x32xf32>
    %75 = arith.subf %67, %74 : vector<16x32xf32>
    %76 = arith.mulf %75, %75 : vector<16x32xf32>
    %cst_30 = arith.constant dense<0.000000e+00> : vector<16xf32>
    %77 = vector.multi_reduction <add>, %76, %cst_30 [1] : vector<16x32xf32> to vector<16xf32>
    %78 = vector.shape_cast %77 : vector<16xf32> to vector<16x1xf32>
    %cst_31 = arith.constant 3.200000e+01 : f32
    %79 = vector.broadcast %cst_31 : f32 to vector<16x1xf32>
    %80 = arith.divf %78, %79 : vector<16x1xf32>
    %cst_32 = arith.constant 9.99999974E-6 : f32
    %81 = vector.broadcast %cst_32 : f32 to vector<16x1xf32>
    %82 = arith.addf %80, %81 : vector<16x1xf32>
    %83 = math.rsqrt %82 : vector<16x1xf32>
    %84 = vector.broadcast %83 : vector<16x1xf32> to vector<16x32xf32>
    %85 = arith.mulf %75, %84 : vector<16x32xf32>
    %86 = vector.broadcast %68 : vector<1x32xf32> to vector<16x32xf32>
    %87 = arith.mulf %85, %86 : vector<16x32xf32>
    %88 = vector.broadcast %69 : vector<1x32xf32> to vector<16x32xf32>
    %89 = arith.addf %87, %88 : vector<16x32xf32>
    %90 = arith.truncf %89 : vector<16x32xf32> to vector<16x32xbf16>
    %c0_33 = arith.constant 0 : index
    %c0_34 = arith.constant 0 : index
    %91 = vector.load %arg10[%c0_33, %c0_34] : memref<32x128xbf16, #tpu.memory_space<vmem>>, vector<32x128xbf16>
    %cst_35 = arith.constant dense<0.000000e+00> : vector<16x128xf32>
    %92 = tpu.matmul %90, %91, %cst_35 {dimension_numbers = #tpu.dot_dimension_numbers<[1], [0], [0], [1], [0, 0, 1, 1], [], []>} : vector<16x32xbf16>, vector<32x128xbf16>, vector<16x128xf32> -> vector<16x128xf32>
    %c0_36 = arith.constant 0 : index
    %c0_37 = arith.constant 0 : index
    %93 = vector.load %arg11[%c0_36, %c0_37] : memref<1x128xf32, #tpu.memory_space<vmem>>, vector<1x128xf32>
    %94 = vector.broadcast %93 : vector<1x128xf32> to vector<16x128xf32>
    %95 = arith.addf %92, %94 : vector<16x128xf32>
    %96 = arith.truncf %95 : vector<16x128xf32> to vector<16x128xbf16>
    %cst_38 = arith.constant 1.703130e+00 : bf16
    %97 = vector.broadcast %cst_38 : bf16 to vector<16x128xbf16>
    %98 = arith.mulf %97, %96 : vector<16x128xbf16>
    %99 = arith.negf %98 : vector<16x128xbf16>
    %100 = math.exp %99 : vector<16x128xbf16>
    %cst_39 = arith.constant 1.000000e+00 : bf16
    %101 = vector.broadcast %cst_39 : bf16 to vector<16x128xbf16>
    %102 = arith.addf %101, %100 : vector<16x128xbf16>
    %103 = arith.divf %101, %102 : vector<16x128xbf16>
    %104 = arith.mulf %96, %103 : vector<16x128xbf16>
    %c0_40 = arith.constant 0 : index
    %c0_41 = arith.constant 0 : index
    %105 = vector.load %arg12[%c0_40, %c0_41] : memref<128x32xbf16, #tpu.memory_space<vmem>>, vector<128x32xbf16>
    %cst_42 = arith.constant dense<0.000000e+00> : vector<16x32xf32>
    %106 = tpu.matmul %104, %105, %cst_42 {dimension_numbers = #tpu.dot_dimension_numbers<[1], [0], [0], [1], [0, 0, 1, 1], [], []>} : vector<16x128xbf16>, vector<128x32xbf16>, vector<16x32xf32> -> vector<16x32xf32>
    %c0_43 = arith.constant 0 : index
    %c0_44 = arith.constant 0 : index
    %107 = vector.load %arg13[%c0_43, %c0_44] : memref<1x32xf32, #tpu.memory_space<vmem>>, vector<1x32xf32>
    %108 = vector.broadcast %107 : vector<1x32xf32> to vector<16x32xf32>
    %109 = arith.addf %106, %108 : vector<16x32xf32>
    %110 = arith.addf %67, %109 : vector<16x32xf32>
    %111 = vector.shape_cast %110 : vector<16x32xf32> to vector<2x8x32xf32>
    %c0_45 = arith.constant 0 : index
    %c0_46 = arith.constant 0 : index
    %c0_47 = arith.constant 0 : index
    %112 = vector.load %arg14[%c0_45, %c0_46, %c0_47] : memref<2x8x32xf32, #tpu.memory_space<vmem>>, vector<2x8x32xf32>
    tpu.vector_store %arg14[%c0_45, %c0_46, %c0_47], %111 {strides = array<i32>} : memref<2x8x32xf32, #tpu.memory_space<vmem>>, vector<2x8x32xf32>,
    return
  }
  func.func @transform_0(%arg0: i32) -> (i32, i32, i32) {
    %c0_i32 = arith.constant 0 : i32
    %c0_i32_0 = arith.constant 0 : i32
    %c0_i32_1 = arith.constant 0 : i32
    return %arg0, %c0_i32, %c0_i32_0 : i32, i32, i32
  }
  func.func @transform_1(%arg0: i32) -> (i32, i32) {
    %c0_i32 = arith.constant 0 : i32
    %c0_i32_0 = arith.constant 0 : i32
    %c0_i32_1 = arith.constant 0 : i32
    return %c0_i32, %c0_i32_0 : i32, i32
  }
  func.func @transform_2(%arg0: i32) -> (i32, i32) {
    %c0_i32 = arith.constant 0 : i32
    %c0_i32_0 = arith.constant 0 : i32
    %c0_i32_1 = arith.constant 0 : i32
    return %c0_i32, %c0_i32_0 : i32, i32
  }
  func.func @transform_3(%arg0: i32) -> (i32, i32) {
    %c0_i32 = arith.constant 0 : i32
    %c0_i32_0 = arith.constant 0 : i32
    %c0_i32_1 = arith.constant 0 : i32
    return %c0_i32, %c0_i32_0 : i32, i32
  }
  func.func @transform_4(%arg0: i32) -> (i32, i32) {
    %c0_i32 = arith.constant 0 : i32
    %c0_i32_0 = arith.constant 0 : i32
    %c0_i32_1 = arith.constant 0 : i32
    return %c0_i32, %c0_i32_0 : i32, i32
  }
  func.func @transform_5(%arg0: i32) -> (i32, i32) {
    %c0_i32 = arith.constant 0 : i32
    %c0_i32_0 = arith.constant 0 : i32
    %c0_i32_1 = arith.constant 0 : i32
    return %c0_i32, %c0_i32_0 : i32, i32
  }
  func.func @transform_6(%arg0: i32) -> (i32, i32) {
    %c0_i32 = arith.constant 0 : i32
    %c0_i32_0 = arith.constant 0 : i32
    %c0_i32_1 = arith.constant 0 : i32
    return %c0_i32, %c0_i32_0 : i32, i32
  }
  func.func @transform_7(%arg0: i32) -> (i32, i32) {
    %c0_i32 = arith.constant 0 : i32
    %c0_i32_0 = arith.constant 0 : i32
    %c0_i32_1 = arith.constant 0 : i32
    return %c0_i32, %c0_i32_0 : i32, i32
  }
  func.func @transform_8(%arg0: i32) -> (i32, i32) {
    %c0_i32 = arith.constant 0 : i32
    %c0_i32_0 = arith.constant 0 : i32
    %c0_i32_1 = arith.constant 0 : i32
    return %c0_i32, %c0_i32_0 : i32, i32
  }
  func.func @transform_9(%arg0: i32) -> (i32, i32) {
    %c0_i32 = arith.constant 0 : i32
    %c0_i32_0 = arith.constant 0 : i32
    %c0_i32_1 = arith.constant 0 : i32
    return %c0_i32, %c0_i32_0 : i32, i32
  }
  func.func @transform_10(%arg0: i32) -> (i32, i32) {
    %c0_i32 = arith.constant 0 : i32
    %c0_i32_0 = arith.constant 0 : i32
    %c0_i32_1 = arith.constant 0 : i32
    return %c0_i32, %c0_i32_0 : i32, i32
  }
  func.func @transform_11(%arg0: i32) -> (i32, i32) {
    %c0_i32 = arith.constant 0 : i32
    %c0_i32_0 = arith.constant 0 : i32
    %c0_i32_1 = arith.constant 0 : i32
    return %c0_i32, %c0_i32_0 : i32, i32
  }
  func.func @transform_12(%arg0: i32) -> (i32, i32) {
    %c0_i32 = arith.constant 0 : i32
    %c0_i32_0 = arith.constant 0 : i32
    %c0_i32_1 = arith.constant 0 : i32
    return %c0_i32, %c0_i32_0 : i32, i32
  }
  func.func @transform_13(%arg0: i32) -> (i32, i32, i32) {
    %c0_i32 = arith.constant 0 : i32
    %c0_i32_0 = arith.constant 0 : i32
    %c0_i32_1 = arith.constant 0 : i32
    return %arg0, %c0_i32, %c0_i32_0 : i32, i32, i32
  }
}

</mosaic_0001>

<bundles_post_ra>
// kernel: tpu_custom_call.1
= control target key start
LH: loop header
LB: loop body
LE: loop exit
PB: predicated region body
PF: predicated region fallthrough
CT: control target
= control target key end

     0   :  { %6 = vsyncpa [#allocation3], 0  ;;  %s114_s0 = inlined_call_operand.hbm [shape: f32[8,128], index: 0, kind: input, shape index: {}]   ;;  %s115_s1 = inlined_call_operand.hbm [shape: f32[8,128], index: 1, kind: output, shape index: {}]  }
   0x1   :  { %7 = vsyncpa [#allocation4], 0  ;;  %s13_s8 = sshll.u32 %s114_s0, 4  ;;  %s96_s9 = smov [#allocation2]   ;;  %s14_s8 = int_to_ptr.hbm [resolvable:$true] %s13_s8 }
   0x2   :  { %s15_s10 = sshll.u32 %s96_s9, 4  ;;  %s16_s10 = int_to_ptr.vmem [resolvable:$true] %s15_s10 }
   0x3   :  { %18 = dma.hbm_to_vmem [thread:$0]  %s14_s8, 128, %s16_s10, [#allocation3]  }
   0x4   :  { %92 = dma.done.wait [#allocation3], 128  }
   0x5   :  { %93 = vsyncadd [#allocation3], 4294967168  ;;  %s97_s11 = smov [#allocation5]   ;;  %s32_s15 = sshll.u32 %s115_s1, 4  ;;  %v23_v0 = vld [vmem:[#allocation2] sm:$0xff]  ;;  %s33_s15 = int_to_ptr.hbm [resolvable:$true] %s32_s15 }
   0x6   :  { %s30_s12 = sshll.u32 %s97_s11, 4  ;;  %24 = vst [vmem:[#allocation5] sm:$0xff] %v23_v0  ;;  %s31_s12 = int_to_ptr.vmem [resolvable:$true] %s30_s12 }
   0x7   :  { %35 = dma.vmem_to_hbm [thread:$0]  %s31_s12, 128, %s33_s15, [#allocation4]  }
   0x8   :  { %94 = dma.done.wait [#allocation4], 128  }
   0x9   :  { %95 = vsyncadd [#allocation4], 4294967168 }
   0xa   :  { %40 = vsyncpa [#allocation3], 1 }
   0xb   :  { %41 = vsyncpa [#allocation4], 1 }

// kernel: _apply.1
= control target key start
LH: loop header
LB: loop body
LE: loop exit
PB: predicated region body
PF: predicated region fallthrough
CT: control target
= control target key end

     0   :  { %vm50_vm0 = vcmask 261120   ;;  %v1980_v4 = vmov 32.0   ;;  %s1982_s21 = smov 120   ;;  %v1985_v61 = vmov 1983009808   ;;  %vm201_vm8 = vcmask 1047556   ;;  %s2609_s0 = inlined_call_operand.vmem [shape: f32[2,8,32], index: 0, kind: input, shape index: {}]   ;;  %s2610_s1 = inlined_call_operand.vmem [shape: f32[1,32], index: 1, kind: input, shape index: {}]   ;;  %s2611_s2 = inlined_call_operand.vmem [shape: f32[1,32], index: 2, kind: input, shape index: {}]   ;;  %s2612_s4 = inlined_call_operand.vmem [shape: f32[1,96], index: 4, kind: input, shape index: {}]   ;;  %s2613_s3 = inlined_call_operand.vmem [shape: bf16[32,96], index: 3, kind: input, shape index: {}]   ;;  %s2614_s6 = inlined_call_operand.vmem [shape: f32[1,32], index: 6, kind: input, shape index: {}]   ;;  %s2615_s5 = inlined_call_operand.vmem [shape: bf16[32,32], index: 5, kind: input, shape index: {}]   ;;  %s2616_s7 = inlined_call_operand.vmem [shape: f32[1,32], index: 7, kind: input, shape index: {}]   ;;  %s2617_s8 = inlined_call_operand.vmem [shape: f32[1,32], index: 8, kind: input, shape index: {}]   ;;  %s2618_s10 = inlined_call_operand.vmem [shape: f32[1,128], index: 10, kind: input, shape index: {}]   ;;  %s2619_s9 = inlined_call_operand.vmem [shape: bf16[32,128], index: 9, kind: input, shape index: {}]   ;;  %s2620_s12 = inlined_call_operand.vmem [shape: f32[1,32], index: 12, kind: input, shape index: {}]   ;;  %s2621_s11 = inlined_call_operand.vmem [shape: bf16[128,32], index: 11, kind: input, shape index: {}]   ;;  %s2622_s13 = inlined_call_operand.vmem [shape: f32[2,8,32], index: 13, kind: output, shape index: {}]  }
   0x1   :  { %v46_v0 = vld [vmem:[%s2609_s0] sm:$0xff]  ;;  %v47_v2 = vld [vmem:[%s2609_s0 + $0x8] sm:$0xff]  ;;  %1924 = vrcp.f32 %v1980_v4  ;;  %v192_v62 = vunpack.c.l.s4 %v1985_v61  ;;  %s1987_s22 = smov 64   ;;  %vm883_vm9 = vcmask 64512   ;;  %vm1135_vm10 = vcmask 1043456   ;;  %s1988_s23 = smov 8  }
   0x2   :  { %v51_v1 = vsel %vm50_vm0, %v46_v0, 0.0  ;;  %v54_v3 = vsel %vm50_vm0, %v47_v2, 0.0  ;;  %v1891_v21 = vld [vmem:[%s2613_s3 + $0x8] sm:$0xff]  ;;  %v1890_v23 = vld [vmem:[%s2613_s3] sm:$0xff]  ;;  %s1989_s24 = smov 16   ;;  %s1990_s25 = smov 24  }
   0x3   :  { %52 = vadd.xlane.f32.xlu0 %v51_v1  ;;  %142 = vmatpush.bf16.msra.mxu0 %v1891_v21  ;;  %v1916_v42 = vld [vmem:[%s2610_s1] ss:$0 sm:$0xff]  ;;  %s1981_s1 = smov 104   ;;  %v2112_v1 = vunpack.c.0.s8 %v192_v62  ;;  %vm1542_vm11 = vcmask 130048   ;;  %vm1545_vm12 = vcmask 195584  }
   0x4   :  { %v1917_v47 = vld [vmem:[%s2611_s2] ss:$0 sm:$0xff]  ;;  %s1983_s2 = smov 112  }
   0x5   :  { %v1918_v52 = vld [vmem:[%s2612_s4] ss:$0 sm:$0xff]  ;;  %s1984_s4 = smov 96  }
   0x7   :  { %v1925_v5 = vpop.eup %1924  ;;  %143 = vmatpush.bf16.msra.mxu0 %v1890_v23 }
   0x8   :  { %v58_v6 = vmul.f32 32.0, %v1925_v5  ;;  %vm62_vm1 = vweird.f32 %v1925_v5 }
   0xa   :  { %v59_v7 = vsub.f32 1.0, %v58_v6 }
   0xb   :  { %55 = vadd.xlane.f32.xlu0 %v54_v3 }
   0xc   :  { %v60_v8 = vmul.f32 %v1925_v5, %v59_v7 }
   0xe   :  { %v61_v9 = vadd.f32 %v1925_v5, %v60_v8 }
  0x10   :  { %v2070_v10 = vsel %vm62_vm1, %v1925_v5, %v61_v9  ;;  %v1986_v5 = vmov 1934713408  }
  0x11   :  { %v206_v6 = vunpack.c.l.s4 %v1986_v5 }
  0x76   :  { %v53_v11 = vpop.xlane.xlu0 %52 }
  0x77   :  { %v64_v12 = vmul.f32 %v2070_v10, %v53_v11 }
  0x79   :  { %v66_v13 = vsub.f32 %v46_v0, %v64_v12 }
  0x7b   :  { %v68_v14 = vmul.f32 %v66_v13, %v66_v13 }
  0x7d   :  { %v70_v15 = vsel %vm50_vm0, %v68_v14, 0.0 }
  0x7e   :  { %71 = vadd.xlane.f32.xlu1 %v70_v15  ;;  %v56_v16 = vpop.xlane.xlu0 %55  ;;  %v2123_v15 = vunpack.c.0.s8 %v206_v6 }
  0x7f   :  { %v65_v17 = vmul.f32 %v2070_v10, %v56_v16 }
  0x81   :  { %v67_v18 = vsub.f32 %v47_v2, %v65_v17 }
  0x83   :  { %v69_v19 = vmul.f32 %v67_v18, %v67_v18 }
  0x85   :  { %v73_v20 = vsel %vm50_vm0, %v69_v19, 0.0 }
  0x86   :  { %74 = vadd.xlane.f32.xlu1 %v73_v20 }
  0xf1   :  { %v72_v22 = vpop.xlane.xlu1 %71 }
  0xf2   :  { %v76_v24 = vmul.f32 %v72_v22, %v2070_v10 }
  0xf4   :  { %v78_v25 = vadd.f32 1e-05, %v76_v24 }
  0xf6   :  { %1926 = vrsqrt.f32 %v78_v25  ;;  %vm86_vm3 = vweird.f32 %v78_v25 }
  0xf9   :  { %v75_v26 = vpop.xlane.xlu1 %74 }
  0xfa   :  { %v77_v27 = vmul.f32 %v75_v26, %v2070_v10 }
  0xfc   :  { %v1927_v28 = vpop.eup %1926  ;;  %v79_v29 = vadd.f32 1e-05, %v77_v27 }
  0xfd   :  { %v81_v30 = vmul.f32 %v1927_v28, %v78_v25  ;;  %vm87_vm2 = vweird.f32 %v1927_v28 }
  0xfe   :  { %1928 = vrsqrt.f32 %v79_v29  ;;  %vm88_vm4 = vmor %vm86_vm3, %vm87_vm2  ;;  %vm96_vm6 = vweird.f32 %v79_v29 }
  0xff   :  { %v82_v31 = vmul.f32 %v1927_v28, %v81_v30 }
 0x101   :  { %v83_v32 = vmul.f32 0.5, %v82_v31 }
 0x103   :  { %v84_v33 = vsub.f32 1.5, %v83_v32 }
 0x104   :  { %v1929_v34 = vpop.eup %1928 }
 0x105   :  { %v85_v35 = vmul.f32 %v1927_v28, %v84_v33  ;;  %v91_v36 = vmul.f32 %v1929_v34, %v79_v29  ;;  %vm97_vm5 = vweird.f32 %v1929_v34 }
 0x106   :  { %vm98_vm7 = vmor %vm96_vm6, %vm97_vm5 }
 0x107   :  { %v92_v37 = vmul.f32 %v1929_v34, %v91_v36  ;;  %v89_v38 = vsel %vm88_vm4, %v1927_v28, %v85_v35 }
 0x108   :  { %v100_v41 = vmul.f32 %v89_v38, %v66_v13 }
 0x109   :  { %v93_v39 = vmul.f32 0.5, %v92_v37 }
 0x10a   :  { %v105_v46 = vmul.f32 %v1916_v42, %v100_v41 }
 0x10b   :  { %v94_v40 = vsub.f32 1.5, %v93_v39 }
 0x10c   :  { %v110_v49 = vadd.f32 %v1917_v47, %v105_v46 }
 0x10d   :  { %v95_v43 = vmul.f32 %v1929_v34, %v94_v40 }
 0x10f   :  { %v99_v44 = vsel %vm98_vm7, %v1929_v34, %v95_v43 }
 0x110   :  { %v101_v45 = vmul.f32 %v99_v44, %v67_v18 }
 0x112   :  { %v106_v48 = vmul.f32 %v1916_v42, %v101_v45 }
 0x114   :  { %v111_v50 = vadd.f32 %v1917_v47, %v106_v48 }
 0x116   :  { %v112_v51 = vpack.c.bf16 %v111_v50, %v110_v49 }
 0x118   :  { %1823 = vmatmul.msk.bf16.vlgmr.msra.gmra.mxu0 %vm50_vm0, %v112_v51 }
 0x195   :  { %v145_v53 = vpop.f32.mrf.mxu0 }
 0x196   :  { %v146_v54 = vadd.f32 %v1918_v52, %v145_v53 }
 0x198   :  { %v2094_v55 = vpack.c.bf16 %v146_v54, %v146_v54 }
 0x19a   :  { %162 = vrot.lane.b32.xlu0 %v2094_v55, %s1981_s1  ;;  %154 = vrot.lane.b32.xlu2 %v2094_v55, %s1982_s21  ;;  %v169_v3 = vshrl.u32 %v2094_v55, 16 }
 0x19d   :  { %v147_v56 = vpop.f32.mrf.mxu0 }
 0x19e   :  { %v148_v57 = vadd.f32 %v1918_v52, %v147_v56 }
 0x1a0   :  { %v2098_v58 = vpack.c.bf16 %v148_v57, %v148_v57 }
 0x1a2   :  { %156 = vrot.lane.b32.xlu1 %v2098_v58, %s1982_s21  ;;  %158 = vrot.lane.b32.xlu2 %v2094_v55, %s1983_s2 }
 0x1aa   :  { %160 = vrot.lane.b32.xlu2 %v2098_v58, %s1983_s2 }
 0x1b2   :  { %164 = vrot.lane.b32.xlu2 %v2098_v58, %s1981_s1 }
 0x1ba   :  { %395 = vrot.lane.b32.xlu2 %v2094_v55, %s1984_s4 }
 0x1f4   :  { %v155_v59 = vpop.permute.xlu2 %154 }
 0x1f5   :  { %399 = vrot.lane.b32.xlu0 %v155_v59, %s1984_s4  ;;  %v170_v0 = vshrl.u32 %v155_v59, 16  ;;  %v168_v2 = vpack.i.b16 %v155_v59, %v2094_v55 }
 0x1f7   :  { %v171_v4 = vpack.i.b16 %v170_v0, %v169_v3  ;;  %v194_v7 = vperm.slane %v168_v2, %v2112_v1 }
 0x1f9   :  { %v221_v11 = vperm.slane %v171_v4, %v2112_v1  ;;  %v203_v16 = vrot.slane %v194_v7, 4 }
 0x1fb   :  { %v229_v19 = vrot.slane %v221_v11, 4 }
 0x1fc   :  { %v159_v60 = vpop.permute.xlu2 %158 }
 0x1fd   :  { %397 = vrot.lane.b32.xlu0 %v2098_v58, %s1984_s4  ;;  %403 = vrot.lane.b32.xlu2 %v159_v60, %s1984_s4  ;;  %v175_v12 = vshrl.u32 %v159_v60, 16 }
 0x204   :  { %v2110_v63 = vpop.permute.xlu2 %160 }
 0x20c   :  { %v163_v8 = vpop.permute.xlu0 %162  ;;  %v2117_v9 = vpop.permute.xlu2 %164 }
 0x20d   :  { %v174_v13 = vpack.i.b16 %v163_v8, %v159_v60  ;;  %v176_v14 = vshrl.u32 %v163_v8, 16  ;;  %407 = vrot.lane.b32.xlu1 %v163_v8, %s1984_s4  ;;  %409 = vrot.lane.b32.xlu0 %v2117_v9, %s1984_s4 }
 0x20f   :  { %v177_v17 = vpack.i.b16 %v176_v14, %v175_v12  ;;  %v199_v18 = vperm.slane %v174_v13, %v2112_v1  ;;  %v188_v13 = vshrl.u32 %v2117_v9, 16 }
 0x211   :  { %v200_v20 = vrot.slane %v199_v18, 4  ;;  %v204_v21 = vsel %vm201_vm8, %v199_v18, %v203_v16  ;;  %v226_v22 = vperm.slane %v177_v17, %v2112_v1  ;;  %v187_v16 = vshrl.u32 %v2110_v63, 16 }
 0x212   :  { %v212_v23 = vperm.slane %v204_v21, %v2123_v15  ;;  %v186_v18 = vpack.i.b16 %v2117_v9, %v2110_v63 }
 0x213   :  { %v202_v24 = vsel %vm201_vm8, %v200_v20, %v194_v7  ;;  %v227_v25 = vrot.slane %v226_v22, 4  ;;  %v230_v26 = vsel %vm201_vm8, %v226_v22, %v229_v19  ;;  %v189_v19 = vpack.i.b16 %v188_v13, %v187_v16 }
 0x214   :  { %v208_v27 = vperm.slane %v202_v24, %v2123_v15  ;;  %v215_v28 = vrot.slane %v212_v23, 4  ;;  %v238_v29 = vperm.slane %v230_v26, %v2123_v15  ;;  %v2133_v30 = vpop.permute.xlu1 %156  ;;  %v252_v22 = vperm.slane %v186_v18, %v2112_v1  ;;  %v396_v24 = vpop.permute.xlu2 %395 }
 0x215   :  { %v228_v31 = vsel %vm201_vm8, %v227_v25, %v221_v11  ;;  %401 = vrot.lane.b32.xlu2 %v2133_v30, %s1984_s4  ;;  %405 = vrot.lane.b32.xlu1 %v2110_v63, %s1984_s4  ;;  %v182_v7 = vshrl.u32 %v2133_v30, 16  ;;  %v180_v11 = vpack.i.b16 %v2133_v30, %v2098_v58  ;;  %v278_v23 = vperm.slane %v189_v19, %v2112_v1 }
 0x216   :  { %v213_v32 = vrot.slane %v208_v27, 4  ;;  %v216_v33 = vsel %vm201_vm8, 0, %v215_v28  ;;  %v234_v34 = vperm.slane %v228_v31, %v2123_v15  ;;  %v241_v35 = vrot.slane %v238_v29, 4  ;;  %639 = vrot.lane.b32.xlu0 %v2094_v55, %s1987_s22 }
 0x217   :  { %v300_v36 = vrot.slane %v216_v33, 4  ;;  %v295_v37 = vsel %vm201_vm8, %v215_v28, %v208_v27  ;;  %v247_v14 = vperm.slane %v180_v11, %v2112_v1  ;;  %v253_v28 = vrot.slane %v252_v22, 4 }
 0x218   :  { %v239_v38 = vrot.slane %v234_v34, 4  ;;  %v242_v39 = vsel %vm201_vm8, 0, %v241_v35  ;;  %v214_v40 = vsel %vm201_vm8, 0, %v213_v32  ;;  %v314_v44 = vsel %vm201_vm8, %v241_v35, %v234_v34 }
 0x219   :  { %v319_v41 = vrot.slane %v242_v39, 4  ;;  %v301_v43 = vsel %vm201_vm8, %v300_v36, %v214_v40  ;;  %v299_v46 = vperm.slane %v295_v37, %v2112_v1  ;;  %v318_v52 = vperm.slane %v314_v44, %v2112_v1 }
 0x21a   :  { %v240_v42 = vsel %vm201_vm8, 0, %v239_v38  ;;  %v305_v45 = vperm.slane %v301_v43, %v2112_v1  ;;  %v255_v20 = vrot.slane %v247_v14, 4  ;;  %v279_v31 = vrot.slane %v278_v23, 4 }
 0x21b   :  { %v320_v48 = vsel %vm201_vm8, %v319_v41, %v240_v42  ;;  %v254_v32 = vsel %vm201_vm8, %v253_v28, %v247_v14 }
 0x21c   :  { %v306_v47 = vrot.slane %v305_v45, 4  ;;  %v324_v50 = vperm.slane %v320_v48, %v2112_v1  ;;  %v260_v37 = vperm.slane %v254_v32, %v2123_v15 }
 0x21d   :  { %643 = vrot.lane.b32.xlu2 %v155_v59, %s1987_s22  ;;  %647 = vrot.lane.b32.xlu1 %v159_v60, %s1987_s22 }
 0x21e   :  { %651 = vrot.lane.b32.xlu0 %v163_v8, %s1987_s22  ;;  %v307_v49 = vsel %vm201_vm8, %v306_v47, %v299_v46  ;;  %v325_v53 = vrot.slane %v324_v50, 4  ;;  %v181_v8 = vshrl.u32 %v2098_v58, 16  ;;  %v265_v42 = vrot.slane %v260_v37, 4 }
 0x21f   :  { %v2159_v51 = vperm.slane %v307_v49, %v2123_v15  ;;  %v414_v47 = vshrl.u32 %v396_v24, 16 }
 0x220   :  { %v326_v54 = vsel %vm201_vm8, %v325_v53, %v318_v52  ;;  %v183_v12 = vpack.i.b16 %v182_v7, %v181_v8  ;;  %v266_v50 = vsel %vm201_vm8, 0, %v265_v42 }
 0x221   :  { %v312_v55 = vrot.slane %v2159_v51, 4  ;;  %v2165_v56 = vperm.slane %v326_v54, %v2123_v15  ;;  %v374_v57 = vshrl.u32 %v2159_v51, 16 }
 0x222   :  { %v273_v17 = vperm.slane %v183_v12, %v2112_v1 }
 0x223   :  { %v373_v59 = vpack.i.b16 %v2165_v56, %v2159_v51  ;;  %v375_v60 = vshrl.u32 %v2165_v56, 16  ;;  %v2174_v61 = vsel %vm201_vm8, 0, %v312_v55  ;;  %v331_v62 = vrot.slane %v2165_v56, 4 }
 0x224   :  { %v380_v4 = vshrl.u32 %v2174_v61, 16  ;;  %v281_v21 = vrot.slane %v273_v17, 4  ;;  %v280_v34 = vsel %vm201_vm8, %v279_v31, %v273_v17 }
 0x225   :  { %641 = vrot.lane.b32.xlu2 %v2098_v58, %s1987_s22  ;;  %v2177_v0 = vpack.i.b16 %v375_v60, %v374_v57  ;;  %v2180_v2 = vsel %vm201_vm8, 0, %v331_v62  ;;  %v256_v58 = vsel %vm201_vm8, %v252_v22, %v255_v20  ;;  %v286_v38 = vperm.slane %v280_v34, %v2123_v15 }
 0x226   :  { %v379_v3 = vpack.i.b16 %v2180_v2, %v2174_v61  ;;  %v381_v5 = vshrl.u32 %v2180_v2, 16  ;;  %v282_v25 = vsel %vm201_vm8, %v278_v23, %v281_v21  ;;  %v264_v27 = vperm.slane %v256_v58, %v2123_v15 }
 0x227   :  { %v290_v29 = vperm.slane %v282_v25, %v2123_v15  ;;  %v291_v44 = vrot.slane %v286_v38, 4 }
 0x228   :  { %v2186_v6 = vpack.i.b16 %v381_v5, %v380_v4  ;;  %v267_v33 = vrot.slane %v264_v27, 4 }
 0x229   :  { %v293_v35 = vrot.slane %v290_v29, 4  ;;  %v292_v53 = vsel %vm201_vm8, 0, %v291_v44 }
 0x22a   :  { %v268_v39 = vsel %vm201_vm8, 0, %v267_v33  ;;  %v2223_v22 = vsel %vm201_vm8, %v267_v33, %v260_v37 }
 0x22b   :  { %v294_v40 = vsel %vm201_vm8, 0, %v293_v35  ;;  %v338_v45 = vrot.slane %v268_v39, 4  ;;  %v2218_v16 = vsel %vm201_vm8, %v293_v35, %v286_v38 }
 0x22c   :  { %v357_v46 = vrot.slane %v294_v40, 4  ;;  %v356_v29 = vperm.slane %v2218_v16, %v2112_v1 }
 0x22d   :  { %v339_v54 = vsel %vm201_vm8, %v338_v45, %v266_v50 }
 0x22e   :  { %v358_v62 = vsel %vm201_vm8, %v357_v46, %v292_v53  ;;  %v343_v14 = vperm.slane %v339_v54, %v2112_v1 }
 0x22f   :  { %v362_v17 = vperm.slane %v358_v62, %v2112_v1 }
 0x230   :  { %v2229_v28 = vrot.slane %v343_v14, 4 }
 0x231   :  { %v2233_v31 = vrot.slane %v362_v17, 4 }
 0x257   :  { %v404_v36 = vpop.permute.xlu2 %403 }
 0x258   :  { %v420_v8 = vshrl.u32 %v404_v36, 16 }
 0x267   :  { %v400_v26 = vpop.permute.xlu0 %399 }
 0x268   :  { %v415_v43 = vshrl.u32 %v400_v26, 16  ;;  %v413_v48 = vpack.i.b16 %v400_v26, %v396_v24 }
 0x26a   :  { %v416_v52 = vpack.i.b16 %v415_v43, %v414_v47  ;;  %v439_v55 = vperm.slane %v413_v48, %v2112_v1 }
 0x26c   :  { %v465_v11 = vperm.slane %v416_v52, %v2112_v1  ;;  %v447_v18 = vrot.slane %v439_v55, 4 }
 0x26e   :  { %v473_v58 = vrot.slane %v465_v11, 4 }
 0x26f   :  { %v398_v41 = vpop.permute.xlu0 %397  ;;  %v402_v49 = vpop.permute.xlu2 %401 }
 0x270   :  { %v426_v57 = vshrl.u32 %v398_v41, 16  ;;  %v427_v60 = vshrl.u32 %v402_v49, 16  ;;  %v425_v4 = vpack.i.b16 %v402_v49, %v398_v41 }
 0x272   :  { %v428_v19 = vpack.i.b16 %v427_v60, %v426_v57  ;;  %v491_v23 = vperm.slane %v425_v4, %v2112_v1 }
 0x274   :  { %v517_v32 = vperm.slane %v428_v19, %v2112_v1 }
 0x276   :  { %v525_v52 = vrot.slane %v517_v32, 4 }
 0x277   :  { %v644_v41 = vpop.permute.xlu2 %643 }
 0x278   :  { %v659_v57 = vshrl.u32 %v644_v41, 16 }
 0x27f   :  { %v408_v5 = vpop.permute.xlu1 %407  ;;  %v410_v7 = vpop.permute.xlu0 %409 }
 0x280   :  { %v419_v12 = vpack.i.b16 %v408_v5, %v404_v36  ;;  %v421_v13 = vshrl.u32 %v408_v5, 16  ;;  %v499_v36 = vrot.slane %v491_v23, 4  ;;  %v433_v43 = vshrl.u32 %v410_v7, 16 }
 0x282   :  { %v422_v20 = vpack.i.b16 %v421_v13, %v420_v8  ;;  %v444_v21 = vperm.slane %v419_v12, %v2112_v1 }
 0x284   :  { %v445_v24 = vrot.slane %v444_v21, 4  ;;  %v448_v25 = vsel %vm201_vm8, %v444_v21, %v447_v18  ;;  %v470_v26 = vperm.slane %v422_v20, %v2112_v1 }
 0x285   :  { %v456_v27 = vperm.slane %v448_v25, %v2123_v15 }
 0x286   :  { %v446_v33 = vsel %vm201_vm8, %v445_v24, %v439_v55  ;;  %v471_v34 = vrot.slane %v470_v26, 4  ;;  %v474_v35 = vsel %vm201_vm8, %v470_v26, %v473_v58 }
 0x287   :  { %v452_v37 = vperm.slane %v446_v33, %v2123_v15  ;;  %v459_v38 = vrot.slane %v456_v27, 4  ;;  %v482_v39 = vperm.slane %v474_v35, %v2123_v15  ;;  %v406_v40 = vpop.permute.xlu1 %405 }
 0x288   :  { %v472_v42 = vsel %vm201_vm8, %v471_v34, %v465_v11  ;;  %v431_v44 = vpack.i.b16 %v410_v7, %v406_v40  ;;  %v432_v45 = vshrl.u32 %v406_v40, 16  ;;  %v640_v46 = vpop.permute.xlu0 %639 }
 0x289   :  { %v457_v47 = vrot.slane %v452_v37, 4  ;;  %v460_v48 = vsel %vm201_vm8, 0, %v459_v38  ;;  %v478_v49 = vperm.slane %v472_v42, %v2123_v15  ;;  %v485_v50 = vrot.slane %v482_v39, 4 }
 0x28a   :  { %v434_v53 = vpack.i.b16 %v433_v43, %v432_v45  ;;  %v496_v54 = vperm.slane %v431_v44, %v2112_v1  ;;  %v657_v55 = vpack.i.b16 %v644_v41, %v640_v46  ;;  %v544_v62 = vrot.slane %v460_v48, 4 }
 0x28b   :  { %v486_v60 = vsel %vm201_vm8, 0, %v485_v50  ;;  %v658_v4 = vshrl.u32 %v640_v46, 16  ;;  %v483_v5 = vrot.slane %v478_v49, 4  ;;  %v458_v12 = vsel %vm201_vm8, 0, %v457_v47 }
 0x28c   :  { %v497_v7 = vrot.slane %v496_v54, 4  ;;  %v500_v8 = vsel %vm201_vm8, %v496_v54, %v499_v36  ;;  %v522_v11 = vperm.slane %v434_v53, %v2112_v1  ;;  %v563_v13 = vrot.slane %v486_v60, 4 }
 0x28d   :  { %v508_v14 = vperm.slane %v500_v8, %v2123_v15  ;;  %v660_v17 = vpack.i.b16 %v659_v57, %v658_v4  ;;  %v683_v21 = vperm.slane %v657_v55, %v2112_v1  ;;  %v539_v27 = vsel %vm201_vm8, %v459_v38, %v452_v37 }
 0x28e   :  { %v498_v18 = vsel %vm201_vm8, %v497_v7, %v491_v23  ;;  %v523_v19 = vrot.slane %v522_v11, 4  ;;  %v526_v20 = vsel %vm201_vm8, %v522_v11, %v525_v52  ;;  %v484_v23 = vsel %vm201_vm8, 0, %v483_v5 }
 0x28f   :  { %v504_v58 = vperm.slane %v498_v18, %v2123_v15  ;;  %v511_v24 = vrot.slane %v508_v14, 4  ;;  %v534_v25 = vperm.slane %v526_v20, %v2123_v15  ;;  %v648_v26 = vpop.permute.xlu1 %647  ;;  %v709_v34 = vperm.slane %v660_v17, %v2112_v1 }
 0x290   :  { %v524_v33 = vsel %vm201_vm8, %v523_v19, %v517_v32  ;;  %v664_v35 = vshrl.u32 %v648_v26, 16  ;;  %v652_v36 = vpop.permute.xlu0 %651  ;;  %v691_v43 = vrot.slane %v683_v21, 4  ;;  %v543_v46 = vperm.slane %v539_v27, %v2112_v1 }
 0x291   :  { %v509_v39 = vrot.slane %v504_v58, 4  ;;  %v512_v40 = vsel %vm201_vm8, 0, %v511_v24  ;;  %v530_v41 = vperm.slane %v524_v33, %v2123_v15  ;;  %v537_v42 = vrot.slane %v534_v25, 4 }
 0x292   :  { %v663_v44 = vpack.i.b16 %v652_v36, %v648_v26  ;;  %v665_v45 = vshrl.u32 %v652_v36, 16  ;;  %v582_v38 = vrot.slane %v512_v40, 4  ;;  %v545_v47 = vsel %vm201_vm8, %v544_v62, %v458_v12 }
 0x293   :  { %v535_v37 = vrot.slane %v530_v41, 4  ;;  %v538_v32 = vsel %vm201_vm8, 0, %v537_v42  ;;  %v717_v48 = vrot.slane %v709_v34, 4  ;;  %v549_v54 = vperm.slane %v545_v47, %v2112_v1 }
 0x294   :  { %v666_v52 = vpack.i.b16 %v665_v45, %v664_v35  ;;  %v688_v53 = vperm.slane %v663_v44, %v2112_v1  ;;  %v510_v55 = vsel %vm201_vm8, 0, %v509_v39  ;;  %v601_v57 = vrot.slane %v538_v32, 4 }
 0x295   :  { %v558_v60 = vsel %vm201_vm8, %v485_v50, %v478_v49  ;;  %v564_v4 = vsel %vm201_vm8, %v563_v13, %v484_v23  ;;  %v550_v11 = vrot.slane %v549_v54, 4  ;;  %v536_v14 = vsel %vm201_vm8, 0, %v535_v37 }
 0x296   :  { %v689_v5 = vrot.slane %v688_v53, 4  ;;  %v692_v7 = vsel %vm201_vm8, %v688_v53, %v691_v43  ;;  %v714_v8 = vperm.slane %v666_v52, %v2112_v1  ;;  %v568_v12 = vperm.slane %v564_v4, %v2112_v1 }
 0x297   :  { %v700_v62 = vperm.slane %v692_v7, %v2123_v15  ;;  %v577_v17 = vsel %vm201_vm8, %v511_v24, %v504_v58  ;;  %v551_v13 = vsel %vm201_vm8, %v550_v11, %v543_v46  ;;  %v562_v26 = vperm.slane %v558_v60, %v2112_v1 }
 0x298   :  { %v690_v18 = vsel %vm201_vm8, %v689_v5, %v683_v21  ;;  %v715_v49 = vrot.slane %v714_v8, 4  ;;  %v718_v50 = vsel %vm201_vm8, %v714_v8, %v717_v48  ;;  %v555_v33 = vperm.slane %v551_v13, %v2123_v15 }
 0x299   :  { %v696_v19 = vperm.slane %v690_v18, %v2123_v15  ;;  %v703_v20 = vrot.slane %v700_v62, 4  ;;  %v726_v25 = vperm.slane %v718_v50, %v2123_v15  ;;  %v569_v35 = vrot.slane %v568_v12, 4 }
 0x29a   :  { %v716_v27 = vsel %vm201_vm8, %v715_v49, %v709_v34  ;;  %v581_v58 = vperm.slane %v577_v17, %v2112_v1  ;;  %v583_v43 = vsel %vm201_vm8, %v582_v38, %v510_v55  ;;  %v596_v44 = vsel %vm201_vm8, %v537_v42, %v530_v41 }
 0x29b   :  { %v701_v21 = vrot.slane %v696_v19, 4  ;;  %v704_v24 = vsel %vm201_vm8, 0, %v703_v20  ;;  %v722_v36 = vperm.slane %v716_v27, %v2123_v15  ;;  %v729_v23 = vrot.slane %v726_v25, 4 }
 0x29c   :  { %v788_v39 = vrot.slane %v704_v24, 4  ;;  %v570_v40 = vsel %vm201_vm8, %v569_v35, %v562_v26  ;;  %v783_v37 = vsel %vm201_vm8, %v703_v20, %v696_v19  ;;  %v618_v52 = vshrl.u32 %v555_v33, 16 }
 0x29d   :  { %v702_v34 = vsel %vm201_vm8, 0, %v701_v21  ;;  %v727_v45 = vrot.slane %v722_v36, 4  ;;  %v730_v46 = vsel %vm201_vm8, 0, %v729_v23  ;;  %v574_v48 = vperm.slane %v570_v40, %v2123_v15 }
 0x29e   :  { %v789_v32 = vsel %vm201_vm8, %v788_v39, %v702_v34  ;;  %v807_v47 = vrot.slane %v730_v46, 4  ;;  %v556_v54 = vrot.slane %v555_v33, 4  ;;  %v587_v38 = vperm.slane %v583_v43, %v2112_v1 }
 0x29f   :  { %v728_v53 = vsel %vm201_vm8, 0, %v727_v45  ;;  %v600_v41 = vperm.slane %v596_v44, %v2112_v1  ;;  %v617_v42 = vpack.i.b16 %v574_v48, %v555_v33  ;;  %v619_v55 = vshrl.u32 %v574_v48, 16 }
 0x2a0   :  { %v575_v60 = vrot.slane %v574_v48, 4  ;;  %v602_v4 = vsel %vm201_vm8, %v601_v57, %v536_v14  ;;  %v557_v5 = vsel %vm201_vm8, 0, %v556_v54  ;;  %v588_v7 = vrot.slane %v587_v38, 4 }
 0x2a1   :  { %v606_v8 = vperm.slane %v602_v4, %v2112_v1  ;;  %v793_v11 = vperm.slane %v789_v32, %v2112_v1  ;;  %v888_v62 = vsel %vm883_vm9, %v617_v42, 0  ;;  %v620_v12 = vpack.i.b16 %v619_v55, %v618_v52 }
 0x2a2   :  { %v576_v17 = vsel %vm201_vm8, 0, %v575_v60  ;;  %v624_v18 = vshrl.u32 %v557_v5, 16  ;;  %897 = vmatpush.bf16.xpose.msra.mxu1 %v888_v62  ;;  %v589_v13 = vsel %vm201_vm8, %v588_v7, %v581_v58  ;;  %v787_v57 = vperm.slane %v783_v37, %v2112_v1 }
 0x2a3   :  { %v623_v49 = vpack.i.b16 %v576_v17, %v557_v5  ;;  %v625_v50 = vshrl.u32 %v576_v17, 16  ;;  %v607_v19 = vrot.slane %v606_v8, 4  ;;  %v907_v14 = vsel %vm883_vm9, %v620_v12, 0 }
 0x2a4   :  { %v593_v20 = vperm.slane %v589_v13, %v2123_v15  ;;  %v794_v25 = vrot.slane %v793_v11, 4  ;;  %916 = vmatpush.bf16.xpose.msra.mxu2 %v907_v14  ;;  %v808_v35 = vsel %vm201_vm8, %v807_v47, %v728_v53  ;;  %v802_v21 = vsel %vm201_vm8, %v729_v23, %v722_v36 }
 0x2a5   :  { %v926_v26 = vsel %vm883_vm9, %v623_v49, 0  ;;  %v626_v27 = vpack.i.b16 %v625_v50, %v624_v18  ;;  %v608_v33 = vsel %vm201_vm8, %v607_v19, %v600_v41  ;;  %v812_v34 = vperm.slane %v808_v35, %v2112_v1 }
 0x2a6   :  { %935 = vmatpush.bf16.xpose.msra.mxu3 %v926_v26  ;;  %v612_v58 = vperm.slane %v608_v33, %v2123_v15  ;;  %v594_v24 = vrot.slane %v593_v20, 4  ;;  %v795_v39 = vsel %vm201_vm8, %v794_v25, %v787_v57  ;;  %v630_v43 = vshrl.u32 %v593_v20, 16 }
 0x2a7   :  { %v945_v40 = vsel %vm883_vm9, %v626_v27, 0  ;;  %v799_v44 = vperm.slane %v795_v39, %v2123_v15  ;;  %v806_v36 = vperm.slane %v802_v21, %v2112_v1  ;;  %v813_v23 = vrot.slane %v812_v34, 4 }
 0x2a8   :  { %954 = vmatpush.bf16.xpose.msrb.mxu0 %v945_v40  ;;  %v629_v45 = vpack.i.b16 %v612_v58, %v593_v20  ;;  %v631_v46 = vshrl.u32 %v612_v58, 16  ;;  %v595_v37 = vsel %vm201_vm8, 0, %v594_v24  ;;  %v613_v32 = vrot.slane %v612_v58, 4 }
 0x2a9   :  { %v337_v47 = vperm.slane %v2223_v22, %v2112_v1  ;;  %v364_v48 = vsel %vm201_vm8, %v2233_v31, %v356_v29  ;;  %1824 = vmatmul.msk.bf16.vlgmr.msra.gmra.mxu1 %vm883_vm9, %v373_v59  ;;  %v800_v38 = vrot.slane %v799_v44, 4  ;;  %v636_v22 = vshrl.u32 %v595_v37, 16 }
 0x2aa   :  { %v964_v52 = vsel %vm883_vm9, %v629_v45, 0  ;;  %v632_v53 = vpack.i.b16 %v631_v46, %v630_v43  ;;  %v614_v54 = vsel %vm201_vm8, 0, %v613_v32  ;;  %v814_v16 = vsel %vm201_vm8, %v813_v23, %v806_v36 }
 0x2ab   :  { %973 = vmatpush.bf16.xpose.msrb.mxu1 %v964_v52  ;;  %v635_v41 = vpack.i.b16 %v614_v54, %v595_v37  ;;  %v637_v42 = vshrl.u32 %v614_v54, 16  ;;  %1825 = vmatmul.msk.bf16.vlgmr.msra.gmra.mxu2 %vm883_vm9, %v2177_v0  ;;  %v818_v51 = vperm.slane %v814_v16, %v2123_v15  ;;  %v345_v56 = vsel %vm201_vm8, %v2229_v28, %v337_v47 }
 0x2ac   :  { %v983_v29 = vsel %vm883_vm9, %v632_v53, 0  ;;  %v368_v59 = vperm.slane %v364_v48, %v2123_v15  ;;  %v862_v0 = vshrl.u32 %v799_v44, 16  ;;  %v801_v5 = vsel %vm201_vm8, 0, %v800_v38 }
 0x2ad   :  { %1826 = vmatmul.msk.bf16.vlgmr.msra.gmra.mxu3 %vm883_vm9, %v379_v3  ;;  %992 = vmatpush.bf16.xpose.msrb.mxu2 %v983_v29  ;;  %v1002_v31 = vsel %vm883_vm9, %v635_v41, 0  ;;  %v638_v55 = vpack.i.b16 %v637_v42, %v636_v22  ;;  %v861_v60 = vpack.i.b16 %v818_v51, %v799_v44  ;;  %v863_v4 = vshrl.u32 %v818_v51, 16 }
 0x2ae   :  { %1011 = vmatpush.bf16.xpose.msrb.mxu3 %v1002_v31  ;;  %v819_v7 = vrot.slane %v818_v51, 4  ;;  %v349_v8 = vperm.slane %v345_v56, %v2123_v15  ;;  %v868_v62 = vshrl.u32 %v801_v5, 16  ;;  %v369_v18 = vrot.slane %v368_v59, 4  ;;  %v2373_v51 = vpop.permute.xlu2 %641 }
 0x2af   :  { %1827 = vmatmul.msk.bf16.vlgmr.msrb.gmra.mxu0 %vm883_vm9, %v2186_v6  ;;  %v1021_v28 = vsel %vm883_vm9, %v638_v55, 0  ;;  %v1137_v61 = vsel %vm1135_vm10, %v861_v60, 0  ;;  %v864_v2 = vpack.i.b16 %v863_v4, %v862_v0  ;;  %v387_v19 = vshrl.u32 %v368_v59, 16 }
 0x2b0   :  { %1030 = vmatpush.bf16.xpose.msra.mxu0 %v1021_v28  ;;  %v820_v3 = vsel %vm201_vm8, 0, %v819_v7  ;;  %v350_v50 = vrot.slane %v349_v8, 4  ;;  %v370_v57 = vsel %vm201_vm8, 0, %v369_v18  ;;  %v385_v14 = vpack.i.b16 %v368_v59, %v349_v8 }
 0x2b1   :  { %v867_v11 = vpack.i.b16 %v820_v3, %v801_v5  ;;  %v869_v12 = vshrl.u32 %v820_v3, 16  ;;  %v1156_v17 = vsel %vm1135_vm10, %v864_v2, 0  ;;  %v386_v20 = vshrl.u32 %v349_v8, 16 }
 0x2b2   :  { %v351_v25 = vsel %vm201_vm8, 0, %v350_v50  ;;  %v393_v26 = vshrl.u32 %v370_v57, 16 }
 0x2b3   :  { %1146 = vmatpush.bf16.msra.mxu1 %v1137_v61  ;;  %v1175_v6 = vsel %vm1135_vm10, %v867_v11, 0  ;;  %v870_v49 = vpack.i.b16 %v869_v12, %v868_v62  ;;  %v388_v27 = vpack.i.b16 %v387_v19, %v386_v20  ;;  %v391_v33 = vpack.i.b16 %v370_v57, %v351_v25 }
 0x2b4   :  { %v392_v35 = vshrl.u32 %v351_v25, 16 }
 0x2b5   :  { %1165 = vmatpush.bf16.msra.mxu2 %v1156_v17  ;;  %v1194_v13 = vsel %vm1135_vm10, %v870_v49, 0 }
 0x2b6   :  { %1184 = vmatpush.bf16.msra.mxu3 %v1175_v6  ;;  %v394_v21 = vpack.i.b16 %v393_v26, %v392_v35 }
 0x2b8   :  { %1203 = vmatpush.bf16.msrb.mxu0 %v1194_v13 }
 0x2b9   :  { %1828 = vmatmul.msk.bf16.vlgmr.msrb.gmra.mxu1 %vm883_vm9, %v385_v14 }
 0x2bb   :  { %1829 = vmatmul.msk.bf16.vlgmr.msrb.gmra.mxu2 %vm883_vm9, %v388_v27 }
 0x2bd   :  { %1830 = vmatmul.msk.bf16.vlgmr.msrb.gmra.mxu3 %vm883_vm9, %v391_v33 }
 0x2bf   :  { %1831 = vmatmul.msk.bf16.vlgmr.msra.gmra.mxu0 %vm883_vm9, %v394_v21 }
 0x326   :  { %v899_v58 = vpop.f32.mrf.mxu1 }
 0x327   :  { %v1036_v24 = vsel %vm883_vm9, %v899_v58, -inf }
 0x328   :  { %1037 = vmax.xlane.f32.xlu0 %v1036_v24 }
 0x32c   :  { %v956_v39 = vpop.f32.mrf.mxu0 }
 0x32d   :  { %v1045_v40 = vsel %vm883_vm9, %v956_v39, -inf }
 0x32e   :  { %1046 = vmax.xlane.f32.xlu2 %v1045_v40  ;;  %v901_v43 = vpop.f32.mrf.mxu1  ;;  %v918_v44 = vpop.f32.mrf.mxu2 }
 0x32f   :  { %v1039_v37 = vsel %vm883_vm9, %v918_v44, -inf }
 0x330   :  { %v937_v34 = vpop.f32.mrf.mxu3 }
 0x331   :  { %v1042_v45 = vsel %vm883_vm9, %v937_v34, -inf }
 0x332   :  { %1043 = vmax.xlane.f32.xlu1 %v1042_v45 }
 0x334   :  { %v958_v46 = vpop.f32.mrf.mxu0 }
 0x336   :  { %1040 = vmax.xlane.f32.xlu2 %v1039_v37  ;;  %v920_v32 = vpop.f32.mrf.mxu2  ;;  %v975_v36 = vpop.f32.mrf.mxu1 }
 0x337   :  { %v1048_v48 = vsel %vm883_vm9, %v975_v36, -inf }
 0x338   :  { %v939_v23 = vpop.f32.mrf.mxu3 }
 0x33c   :  { %v1032_v47 = vpop.f32.mrf.mxu0 }
 0x33d   :  { %v1057_v52 = vsel %vm883_vm9, %v1032_v47, -inf }
 0x33e   :  { %1049 = vmax.xlane.f32.xlu2 %v1048_v48  ;;  %1058 = vmax.xlane.f32.xlu1 %v1057_v52  ;;  %v977_v53 = vpop.f32.mrf.mxu1  ;;  %v994_v54 = vpop.f32.mrf.mxu2 }
 0x33f   :  { %v1051_v42 = vsel %vm883_vm9, %v994_v54, -inf }
 0x340   :  { %v1013_v38 = vpop.f32.mrf.mxu3 }
 0x341   :  { %v1054_v41 = vsel %vm883_vm9, %v1013_v38, -inf }
 0x342   :  { %1055 = vmax.xlane.f32.xlu0 %v1054_v41 }
 0x344   :  { %v1034_v22 = vpop.f32.mrf.mxu0 }
 0x346   :  { %1052 = vmax.xlane.f32.xlu1 %v1051_v42  ;;  %v996_v16 = vpop.f32.mrf.mxu2 }
 0x348   :  { %v1015_v29 = vpop.f32.mrf.mxu3 }
 0x356   :  { %653 = vrot.lane.b32.xlu2 %v2117_v9, %s1987_s22  ;;  %645 = vrot.lane.b32.xlu0 %v2133_v30, %s1987_s22 }
 0x35f   :  { %649 = vrot.lane.b32.xlu1 %v2110_v63, %s1987_s22 }
 0x39b   :  { %v1038_v56 = vpop.xlane.xlu0 %1037 }
 0x39c   :  { %v1060_v59 = vsub.f32 %v899_v58, %v1038_v56 }
 0x39e   :  { %v1068_v31 = vmul.f32 1.442695, %v1060_v59 }
 0x3a0   :  { %1930 = vpow2.f32 %v1068_v31 }
 0x3a1   :  { %v1047_v55 = vpop.xlane.xlu2 %1046 }
 0x3a2   :  { %v1063_v63 = vsub.f32 %v956_v39, %v1047_v55 }
 0x3a4   :  { %v1074_v2 = vmul.f32 1.442695, %v1063_v63 }
 0x3a5   :  { %v1044_v0 = vpop.xlane.xlu1 %1043 }
 0x3a6   :  { %v1062_v60 = vsub.f32 %v937_v34, %v1044_v0  ;;  %v2375_v4 = vpop.eup %1930 }
 0x3a7   :  { %v1084_v9 = vsel %vm883_vm9, %v2375_v4, 0.0 }
 0x3a8   :  { %v1072_v5 = vmul.f32 1.442695, %v1062_v60  ;;  %1085 = vadd.xlane.f32.xlu2 %v1084_v9 }
 0x3a9   :  { %v1041_v30 = vpop.xlane.xlu2 %1040 }
 0x3aa   :  { %1932 = vpow2.f32 %v1072_v5  ;;  %v1061_v7 = vsub.f32 %v918_v44, %v1041_v30  ;;  %v670_v44 = vshrl.u32 %v2373_v51, 16 }
 0x3ac   :  { %v1070_v28 = vmul.f32 1.442695, %v1061_v7 }
 0x3ae   :  { %1934 = vpow2.f32 %v1070_v28 }
 0x3af   :  { %1936 = vpow2.f32 %v1074_v2 }
 0x3b0   :  { %v2379_v61 = vpop.eup %1932 }
 0x3b1   :  { %v1050_v3 = vpop.xlane.xlu2 %1049  ;;  %v1059_v8 = vpop.xlane.xlu1 %1058  ;;  %v1090_v11 = vsel %vm883_vm9, %v2379_v61, 0.0 }
 0x3b2   :  { %1091 = vadd.xlane.f32.xlu1 %v1090_v11  ;;  %v1064_v12 = vsub.f32 %v975_v36, %v1050_v3  ;;  %v1067_v14 = vsub.f32 %v1032_v47, %v1059_v8 }
 0x3b4   :  { %v2383_v62 = vpop.eup %1934  ;;  %v1076_v49 = vmul.f32 1.442695, %v1064_v12  ;;  %v1082_v27 = vmul.f32 1.442695, %v1067_v14 }
 0x3b5   :  { %v1056_v17 = vpop.xlane.xlu0 %1055  ;;  %v1087_v18 = vsel %vm883_vm9, %v2383_v62, 0.0  ;;  %v2387_v19 = vpop.eup %1936 }
 0x3b6   :  { %v1066_v6 = vsub.f32 %v1013_v38, %v1056_v17  ;;  %1088 = vadd.xlane.f32.xlu0 %v1087_v18  ;;  %v1093_v25 = vsel %vm883_vm9, %v2387_v19, 0.0 }
 0x3b8   :  { %v1080_v50 = vmul.f32 1.442695, %v1066_v6 }
 0x3b9   :  { %v1053_v13 = vpop.xlane.xlu1 %1052  ;;  %v654_v37 = vpop.permute.xlu2 %653 }
 0x3ba   :  { %1938 = vpow2.f32 %v1080_v50  ;;  %v1065_v57 = vsub.f32 %v994_v54, %v1053_v13  ;;  %v677_v23 = vshrl.u32 %v654_v37, 16 }
 0x3bb   :  { %1940 = vpow2.f32 %v1076_v49 }
 0x3bc   :  { %v1078_v20 = vmul.f32 1.442695, %v1065_v57 }
 0x3be   :  { %1942 = vpow2.f32 %v1078_v20  ;;  %1094 = vadd.xlane.f32.xlu0 %v1093_v25 }
 0x3bf   :  { %1944 = vpow2.f32 %v1082_v27 }
 0x3c0   :  { %v2391_v26 = vpop.eup %1938 }
 0x3c1   :  { %v1102_v33 = vsel %vm883_vm9, %v2391_v26, 0.0  ;;  %v2395_v35 = vpop.eup %1940 }
 0x3c2   :  { %1103 = vadd.xlane.f32.xlu2 %v1102_v33  ;;  %v1096_v24 = vsel %vm883_vm9, %v2395_v35, 0.0 }
 0x3c4   :  { %v2397_v21 = vpop.eup %1942 }
 0x3c5   :  { %v1099_v58 = vsel %vm883_vm9, %v2397_v21, 0.0  ;;  %v2403_v40 = vpop.eup %1944 }
 0x3c6   :  { %1100 = vadd.xlane.f32.xlu1 %v1099_v58  ;;  %1097 = vadd.xlane.f32.xlu0 %v1096_v24  ;;  %v1105_v45 = vsel %vm883_vm9, %v2403_v40, 0.0 }
 0x3c8   :  { %v646_v39 = vpop.permute.xlu0 %645 }
 0x3c9   :  { %v671_v43 = vshrl.u32 %v646_v39, 16  ;;  %v669_v34 = vpack.i.b16 %v646_v39, %v2373_v51 }
 0x3cb   :  { %v672_v46 = vpack.i.b16 %v671_v43, %v670_v44  ;;  %v735_v32 = vperm.slane %v669_v34, %v2112_v1 }
 0x3cd   :  { %v761_v47 = vperm.slane %v672_v46, %v2112_v1  ;;  %v743_v53 = vrot.slane %v735_v32, 4 }
 0x3ce   :  { %1106 = vadd.xlane.f32.xlu1 %v1105_v45 }
 0x3cf   :  { %v769_v41 = vrot.slane %v761_v47, 4 }
 0x3d1   :  { %v650_v36 = vpop.permute.xlu1 %649 }
 0x3d2   :  { %v675_v48 = vpack.i.b16 %v654_v37, %v650_v36  ;;  %v676_v52 = vshrl.u32 %v650_v36, 16 }
 0x3d4   :  { %v678_v54 = vpack.i.b16 %v677_v23, %v676_v52  ;;  %v740_v38 = vperm.slane %v675_v48, %v2112_v1 }
 0x3d6   :  { %v741_v22 = vrot.slane %v740_v38, 4  ;;  %v744_v42 = vsel %vm201_vm8, %v740_v38, %v743_v53  ;;  %v766_v16 = vperm.slane %v678_v54, %v2112_v1 }
 0x3d7   :  { %v752_v29 = vperm.slane %v744_v42, %v2123_v15 }
 0x3d8   :  { %v742_v51 = vsel %vm201_vm8, %v741_v22, %v735_v32  ;;  %v767_v56 = vrot.slane %v766_v16, 4  ;;  %v770_v59 = vsel %vm201_vm8, %v766_v16, %v769_v41 }
 0x3d9   :  { %v748_v31 = vperm.slane %v742_v51, %v2123_v15  ;;  %v755_v55 = vrot.slane %v752_v29, 4  ;;  %v778_v0 = vperm.slane %v770_v59, %v2123_v15 }
 0x3da   :  { %v768_v60 = vsel %vm201_vm8, %v767_v56, %v761_v47 }
 0x3db   :  { %v753_v5 = vrot.slane %v748_v31, 4  ;;  %v756_v9 = vsel %vm201_vm8, 0, %v755_v55  ;;  %v774_v30 = vperm.slane %v768_v60, %v2123_v15  ;;  %v781_v7 = vrot.slane %v778_v0, 4 }
 0x3dc   :  { %v826_v63 = vrot.slane %v756_v9, 4  ;;  %v821_v8 = vsel %vm201_vm8, %v755_v55, %v748_v31 }
 0x3dd   :  { %v754_v28 = vsel %vm201_vm8, 0, %v753_v5  ;;  %v779_v2 = vrot.slane %v774_v30, 4  ;;  %v782_v3 = vsel %vm201_vm8, 0, %v781_v7  ;;  %v840_v6 = vsel %vm201_vm8, %v781_v7, %v774_v30 }
 0x3de   :  { %v827_v11 = vsel %vm201_vm8, %v826_v63, %v754_v28  ;;  %v845_v12 = vrot.slane %v782_v3, 4  ;;  %v825_v50 = vperm.slane %v821_v8, %v2112_v1  ;;  %v844_v20 = vperm.slane %v840_v6, %v2112_v1 }
 0x3df   :  { %v780_v17 = vsel %vm201_vm8, 0, %v779_v2  ;;  %v831_v18 = vperm.slane %v827_v11, %v2112_v1 }
 0x3e0   :  { %v846_v49 = vsel %vm201_vm8, %v845_v12, %v780_v17 }
 0x3e1   :  { %v832_v13 = vrot.slane %v831_v18, 4  ;;  %v850_v57 = vperm.slane %v846_v49, %v2112_v1 }
 0x3e3   :  { %v833_v14 = vsel %vm201_vm8, %v832_v13, %v825_v50  ;;  %v851_v25 = vrot.slane %v850_v57, 4 }
 0x3e4   :  { %v837_v27 = vperm.slane %v833_v14, %v2123_v15 }
 0x3e5   :  { %v852_v33 = vsel %vm201_vm8, %v851_v25, %v844_v20 }
 0x3e6   :  { %v856_v58 = vperm.slane %v852_v33, %v2123_v15  ;;  %v838_v24 = vrot.slane %v837_v27, 4  ;;  %v874_v39 = vshrl.u32 %v837_v27, 16 }
 0x3e8   :  { %v873_v43 = vpack.i.b16 %v856_v58, %v837_v27  ;;  %v875_v44 = vshrl.u32 %v856_v58, 16  ;;  %v839_v34 = vsel %vm201_vm8, 0, %v838_v24  ;;  %v857_v45 = vrot.slane %v856_v58, 4 }
 0x3e9   :  { %v880_v23 = vshrl.u32 %v839_v34, 16 }
 0x3ea   :  { %v1213_v46 = vsel %vm1135_vm10, %v873_v43, 0  ;;  %v876_v37 = vpack.i.b16 %v875_v44, %v874_v39  ;;  %v858_v32 = vsel %vm201_vm8, 0, %v857_v45 }
 0x3eb   :  { %1222 = vmatpush.bf16.msrb.mxu1 %v1213_v46  ;;  %v879_v36 = vpack.i.b16 %v858_v32, %v839_v34  ;;  %v881_v47 = vshrl.u32 %v858_v32, 16 }
 0x3ec   :  { %v1232_v48 = vsel %vm1135_vm10, %v876_v37, 0 }
 0x3ed   :  { %1241 = vmatpush.bf16.msrb.mxu2 %v1232_v48  ;;  %v1251_v52 = vsel %vm1135_vm10, %v879_v36, 0  ;;  %v882_v53 = vpack.i.b16 %v881_v47, %v880_v23 }
 0x3ee   :  { %1260 = vmatpush.bf16.msrb.mxu3 %v1251_v52 }
 0x3ef   :  { %v1270_v54 = vsel %vm1135_vm10, %v882_v53, 0 }
 0x3f0   :  { %1279 = vmatpush.bf16.msra.mxu0 %v1270_v54 }
 0x41b   :  { %v1086_v38 = vpop.xlane.xlu2 %1085 }
 0x41c   :  { %1946 = vrcp.f32 %v1086_v38 }
 0x422   :  { %v1947_v41 = vpop.eup %1946 }
 0x423   :  { %v1116_v22 = vmul.f32 %v1947_v41, %v2375_v4 }
 0x425   :  { %v1092_v42 = vpop.xlane.xlu1 %1091  ;;  %v1124_v16 = vpack.c.bf16 %v1116_v22, %v1116_v22 }
 0x426   :  { %1948 = vrcp.f32 %v1092_v42 }
 0x427   :  { %1832 = vmatmul.msk.bf16.vlgmr.msra.gmra.mxu1 %vm883_vm9, %v1124_v16 }
 0x429   :  { %v1089_v29 = vpop.xlane.xlu0 %1088 }
 0x42a   :  { %1950 = vrcp.f32 %v1089_v29 }
 0x42c   :  { %v1949_v51 = vpop.eup %1948 }
 0x42d   :  { %v1118_v56 = vmul.f32 %v1949_v51, %v2379_v61 }
 0x42f   :  { %v1126_v59 = vpack.c.bf16 %v1118_v56, %v1118_v56 }
 0x430   :  { %v1951_v31 = vpop.eup %1950 }
 0x431   :  { %v1117_v55 = vmul.f32 %v1951_v31, %v2383_v62  ;;  %1834 = vmatmul.msk.bf16.vlgmr.msra.gmra.mxu3 %vm883_vm9, %v1126_v59  ;;  %v1095_v0 = vpop.xlane.xlu0 %1094 }
 0x432   :  { %1952 = vrcp.f32 %v1095_v0 }
 0x433   :  { %v1125_v60 = vpack.c.bf16 %v1117_v55, %v1117_v55 }
 0x435   :  { %v1104_v4 = vpop.xlane.xlu2 %1103  ;;  %1833 = vmatmul.msk.bf16.vlgmr.msra.gmra.mxu2 %vm883_vm9, %v1125_v60 }
 0x436   :  { %1954 = vrcp.f32 %v1104_v4 }
 0x438   :  { %v1953_v5 = vpop.eup %1952 }
 0x439   :  { %v1119_v9 = vmul.f32 %v1953_v5, %v2387_v19  ;;  %v1101_v30 = vpop.xlane.xlu1 %1100  ;;  %v1098_v7 = vpop.xlane.xlu0 %1097 }
 0x43a   :  { %1956 = vrcp.f32 %v1101_v30 }
 0x43b   :  { %v1127_v61 = vpack.c.bf16 %v1119_v9, %v1119_v9  ;;  %1958 = vrcp.f32 %v1098_v7 }
 0x43c   :  { %v1955_v63 = vpop.eup %1954 }
 0x43d   :  { %v1122_v62 = vmul.f32 %v1955_v63, %v2391_v26  ;;  %1835 = vmatmul.msk.bf16.vlgmr.msrb.gmra.mxu0 %vm883_vm9, %v1127_v61 }
 0x43f   :  { %v1130_v28 = vpack.c.bf16 %v1122_v62, %v1122_v62 }
 0x440   :  { %v1957_v2 = vpop.eup %1956 }
 0x441   :  { %v1959_v3 = vpop.eup %1958  ;;  %v1121_v8 = vmul.f32 %v1957_v2, %v2397_v21  ;;  %v1107_v11 = vpop.xlane.xlu1 %1106  ;;  %1838 = vmatmul.msk.bf16.vlgmr.msrb.gmra.mxu3 %vm883_vm9, %v1130_v28 }
 0x442   :  { %v1120_v19 = vmul.f32 %v1959_v3, %v2395_v35  ;;  %1960 = vrcp.f32 %v1107_v11 }
 0x443   :  { %v1129_v12 = vpack.c.bf16 %v1121_v8, %v1121_v8 }
 0x444   :  { %v1128_v17 = vpack.c.bf16 %v1120_v19, %v1120_v19 }
 0x445   :  { %1837 = vmatmul.msk.bf16.vlgmr.msrb.gmra.mxu2 %vm883_vm9, %v1129_v12 }
 0x446   :  { %1836 = vmatmul.msk.bf16.vlgmr.msrb.gmra.mxu1 %vm883_vm9, %v1128_v17 }
 0x448   :  { %v1961_v26 = vpop.eup %1960 }
 0x449   :  { %v1123_v18 = vmul.f32 %v1961_v26, %v2403_v40 }
 0x44b   :  { %v1131_v6 = vpack.c.bf16 %v1123_v18, %v1123_v18 }
 0x44d   :  { %1839 = vmatmul.msk.bf16.vlgmr.msra.gmra.mxu0 %vm883_vm9, %v1131_v6 }
 0x4a4   :  { %v1148_v49 = vpop.f32.mrf.mxu1 }
 0x4a5   :  { %v1285_v13 = vpack.c.bf16 %v1148_v49, %v1148_v49 }
 0x4a7   :  { %v1296_v25 = vshrl.u32 %v1285_v13, 16 }
 0x4ac   :  { %v1150_v21 = vpop.f32.mrf.mxu1 }
 0x4b4   :  { %v1186_v50 = vpop.f32.mrf.mxu3 }
 0x4b5   :  { %v1287_v57 = vpack.c.bf16 %v1186_v50, %v1186_v50 }
 0x4b7   :  { %v1302_v24 = vshrl.u32 %v1287_v57, 16 }
 0x4b8   :  { %v1167_v14 = vpop.f32.mrf.mxu2 }
 0x4b9   :  { %v1286_v35 = vpack.c.bf16 %v1167_v14, %v1167_v14 }
 0x4ba   :  { %v1205_v20 = vpop.f32.mrf.mxu0 }
 0x4bb   :  { %v1295_v27 = vpack.i.b16 %v1286_v35, %v1285_v13  ;;  %v1297_v33 = vshrl.u32 %v1286_v35, 16  ;;  %v1288_v58 = vpack.c.bf16 %v1205_v20, %v1205_v20 }
 0x4bc   :  { %v1188_v39 = vpop.f32.mrf.mxu3 }
 0x4bd   :  { %v1298_v43 = vpack.i.b16 %v1297_v33, %v1296_v25  ;;  %v1321_v40 = vperm.slane %v1295_v27, %v2112_v1  ;;  %v1301_v44 = vpack.i.b16 %v1288_v58, %v1287_v57  ;;  %v1303_v34 = vshrl.u32 %v1288_v58, 16 }
 0x4bf   :  { %v1329_v45 = vrot.slane %v1321_v40, 4  ;;  %v1347_v46 = vperm.slane %v1298_v43, %v2112_v1  ;;  %v1304_v37 = vpack.i.b16 %v1303_v34, %v1302_v24  ;;  %v1326_v32 = vperm.slane %v1301_v44, %v2112_v1 }
 0x4c0   :  { %v1169_v36 = vpop.f32.mrf.mxu2 }
 0x4c1   :  { %v1355_v23 = vrot.slane %v1347_v46, 4  ;;  %v1327_v47 = vrot.slane %v1326_v32, 4  ;;  %v1330_v48 = vsel %vm201_vm8, %v1326_v32, %v1329_v45  ;;  %v1352_v52 = vperm.slane %v1304_v37, %v2112_v1 }
 0x4c2   :  { %v1338_v53 = vperm.slane %v1330_v48, %v2123_v15  ;;  %v1207_v54 = vpop.f32.mrf.mxu0 }
 0x4c3   :  { %v1328_v38 = vsel %vm201_vm8, %v1327_v47, %v1321_v40  ;;  %v1353_v41 = vrot.slane %v1352_v52, 4  ;;  %v1356_v22 = vsel %vm201_vm8, %v1352_v52, %v1355_v23  ;;  %v1224_v42 = vpop.f32.mrf.mxu1 }
 0x4c4   :  { %v1334_v16 = vperm.slane %v1328_v38, %v2123_v15  ;;  %v1341_v29 = vrot.slane %v1338_v53, 4  ;;  %v1364_v51 = vperm.slane %v1356_v22, %v2123_v15  ;;  %v1262_v56 = vpop.f32.mrf.mxu3  ;;  %v1289_v31 = vpack.c.bf16 %v1224_v42, %v1224_v42 }
 0x4c5   :  { %v1354_v59 = vsel %vm201_vm8, %v1353_v41, %v1347_v46  ;;  %v1291_v61 = vpack.c.bf16 %v1262_v56, %v1262_v56 }
 0x4c6   :  { %v1339_v55 = vrot.slane %v1334_v16, 4  ;;  %v1342_v0 = vsel %vm201_vm8, 0, %v1341_v29  ;;  %v1360_v60 = vperm.slane %v1354_v59, %v2123_v15  ;;  %v1367_v4 = vrot.slane %v1364_v51, 4 }
 0x4c7   :  { %v1426_v5 = vrot.slane %v1342_v0, 4  ;;  %v1421_v62 = vsel %vm201_vm8, %v1341_v29, %v1334_v16  ;;  %v1308_v12 = vshrl.u32 %v1289_v31, 16  ;;  %v1314_v50 = vshrl.u32 %v1291_v61, 16 }
 0x4c8   :  { %v1340_v9 = vsel %vm201_vm8, 0, %v1339_v55  ;;  %v1365_v30 = vrot.slane %v1360_v60, 4  ;;  %v1368_v7 = vsel %vm201_vm8, 0, %v1367_v4  ;;  %v1243_v63 = vpop.f32.mrf.mxu2  ;;  %v1440_v19 = vsel %vm201_vm8, %v1367_v4, %v1360_v60 }
 0x4c9   :  { %v1427_v28 = vsel %vm201_vm8, %v1426_v5, %v1340_v9  ;;  %v1445_v2 = vrot.slane %v1368_v7, 4  ;;  %v1290_v3 = vpack.c.bf16 %v1243_v63, %v1243_v63  ;;  %v1425_v33 = vperm.slane %v1421_v62, %v2112_v1 }
 0x4ca   :  { %v1366_v8 = vsel %vm201_vm8, 0, %v1365_v30  ;;  %v1431_v11 = vperm.slane %v1427_v28, %v2112_v1  ;;  %v1281_v17 = vpop.f32.mrf.mxu0  ;;  %v1444_v58 = vperm.slane %v1440_v19, %v2112_v1 }
 0x4cb   :  { %v1446_v26 = vsel %vm201_vm8, %v1445_v2, %v1366_v8  ;;  %v1307_v18 = vpack.i.b16 %v1290_v3, %v1289_v31  ;;  %v1309_v6 = vshrl.u32 %v1290_v3, 16  ;;  %v1226_v49 = vpop.f32.mrf.mxu1  ;;  %v1292_v21 = vpack.c.bf16 %v1281_v17, %v1281_v17 }
 0x4cc   :  { %v1264_v13 = vpop.f32.mrf.mxu3  ;;  %v1432_v57 = vrot.slane %v1431_v11, 4  ;;  %v1450_v14 = vperm.slane %v1446_v26, %v2112_v1 }
 0x4cd   :  { %v1310_v35 = vpack.i.b16 %v1309_v6, %v1308_v12  ;;  %v1373_v20 = vperm.slane %v1307_v18, %v2112_v1  ;;  %v1313_v25 = vpack.i.b16 %v1292_v21, %v1291_v61  ;;  %v1315_v27 = vshrl.u32 %v1292_v21, 16 }
 0x4ce   :  { %v1451_v24 = vrot.slane %v1450_v14, 4  ;;  %v1433_v45 = vsel %vm201_vm8, %v1432_v57, %v1425_v33 }
 0x4cf   :  { %v1381_v39 = vrot.slane %v1373_v20, 4  ;;  %v1399_v43 = vperm.slane %v1310_v35, %v2112_v1  ;;  %v1316_v40 = vpack.i.b16 %v1315_v27, %v1314_v50  ;;  %v1378_v44 = vperm.slane %v1313_v25, %v2112_v1 }
 0x4d0   :  { %v1245_v34 = vpop.f32.mrf.mxu2  ;;  %v1452_v46 = vsel %vm201_vm8, %v1451_v24, %v1444_v58  ;;  %v1437_v41 = vperm.slane %v1433_v45, %v2123_v15 }
 0x4d1   :  { %v1407_v37 = vrot.slane %v1399_v43, 4  ;;  %v1379_v32 = vrot.slane %v1378_v44, 4  ;;  %v1382_v36 = vsel %vm201_vm8, %v1378_v44, %v1381_v39  ;;  %v1404_v23 = vperm.slane %v1316_v40, %v2112_v1 }
 0x4d2   :  { %v1390_v47 = vperm.slane %v1382_v36, %v2123_v15  ;;  %v1283_v48 = vpop.f32.mrf.mxu0  ;;  %v1456_v52 = vperm.slane %v1452_v46, %v2123_v15  ;;  %v1438_v19 = vrot.slane %v1437_v41, 4  ;;  %v1500_v50 = vshrl.u32 %v1437_v41, 16 }
 0x4d3   :  { %v1380_v53 = vsel %vm201_vm8, %v1379_v32, %v1373_v20  ;;  %v1405_v54 = vrot.slane %v1404_v23, 4  ;;  %v1408_v38 = vsel %vm201_vm8, %v1404_v23, %v1407_v37 }
 0x4d4   :  { %v1386_v22 = vperm.slane %v1380_v53, %v2123_v15  ;;  %v1393_v42 = vrot.slane %v1390_v47, 4  ;;  %v1416_v16 = vperm.slane %v1408_v38, %v2123_v15  ;;  %v1499_v51 = vpack.i.b16 %v1456_v52, %v1437_v41 }
 0x4d5   :  { %v1406_v29 = vsel %vm201_vm8, %v1405_v54, %v1399_v43  ;;  %v1457_v2 = vrot.slane %v1456_v52, 4  ;;  %v1501_v18 = vshrl.u32 %v1456_v52, 16  ;;  %v1439_v57 = vsel %vm201_vm8, 0, %v1438_v19 }
 0x4d6   :  { %v1391_v56 = vrot.slane %v1386_v22, 4  ;;  %v1394_v59 = vsel %vm201_vm8, 0, %v1393_v42  ;;  %v1412_v31 = vperm.slane %v1406_v29, %v2123_v15  ;;  %v1419_v55 = vrot.slane %v1416_v16, 4  ;;  %v1892_v16 = vld [vmem:[%s2615_s5] sm:$0xff] }
 0x4d7   :  { %v1464_v0 = vrot.slane %v1394_v59, 4  ;;  %v1459_v9 = vsel %vm201_vm8, %v1393_v42, %v1386_v22  ;;  %v1458_v49 = vsel %vm201_vm8, 0, %v1457_v2  ;;  %v1502_v35 = vpack.i.b16 %v1501_v18, %v1500_v50  ;;  %v1893_v42 = vld [vmem:[%s2615_s5 + $0x8] sm:$0xff] }
 0x4d8   :  { %v1392_v60 = vsel %vm201_vm8, 0, %v1391_v56  ;;  %v1417_v4 = vrot.slane %v1412_v31, 4  ;;  %v1420_v5 = vsel %vm201_vm8, 0, %v1419_v55  ;;  %v1478_v62 = vsel %vm201_vm8, %v1419_v55, %v1412_v31  ;;  %1576 = vmatpush.bf16.msra.mxu1 %v1893_v42 }
 0x4d9   :  { %v1465_v30 = vsel %vm201_vm8, %v1464_v0, %v1392_v60  ;;  %v1483_v7 = vrot.slane %v1420_v5, 4  ;;  %v1463_v3 = vperm.slane %v1459_v9, %v2112_v1  ;;  %v1482_v12 = vperm.slane %v1478_v62, %v2112_v1  ;;  %v1919_v0 = vld [vmem:[%s2614_s6] ss:$0 sm:$0xff] }
 0x4da   :  { %v1418_v61 = vsel %vm201_vm8, 0, %v1417_v4  ;;  %v1469_v63 = vperm.slane %v1465_v30, %v2112_v1  ;;  %v1507_v25 = vshrl.u32 %v1458_v49, 16  ;;  %v1505_v24 = vpack.i.b16 %v1458_v49, %v1439_v57  ;;  %v1978_v5 = vld [vmem:[%s2609_s0] sm:$0xff] }
 0x4db   :  { %v1484_v28 = vsel %vm201_vm8, %v1483_v7, %v1418_v61  ;;  %v1506_v39 = vshrl.u32 %v1439_v57, 16  ;;  %v1521_v44 = vunpack.c.l.b16 %v1499_v51  ;;  %v1524_v32 = vunpack.c.l.b16 %v1502_v35  ;;  %v1894_v57 = vld [vmem:[%s2619_s9] sm:$0xff] }
 0x4dc   :  { %v1470_v8 = vrot.slane %v1469_v63, 4  ;;  %v1488_v11 = vperm.slane %v1484_v28, %v2112_v1  ;;  %v1529_v47 = vunpack.c.l.b16 %v1505_v24  ;;  %1577 = vmatpush.bf16.msra.mxu1 %v1892_v16  ;;  %v1979_v63 = vld [vmem:[%s2609_s0 + $0x8] sm:$0xff] }
 0x4de   :  { %v1471_v17 = vsel %vm201_vm8, %v1470_v8, %v1463_v3  ;;  %v1489_v26 = vrot.slane %v1488_v11, 4 }
 0x4df   :  { %v1475_v6 = vperm.slane %v1471_v17, %v2123_v15 }
 0x4e0   :  { %v1490_v21 = vsel %vm201_vm8, %v1489_v26, %v1482_v12 }
 0x4e1   :  { %v1494_v13 = vperm.slane %v1490_v21, %v2123_v15  ;;  %v1476_v14 = vrot.slane %v1475_v6, 4  ;;  %v1512_v20 = vshrl.u32 %v1475_v6, 16  ;;  %v1508_v15 = vpack.i.b16 %v1507_v25, %v1506_v39 }
 0x4e3   :  { %v1513_v1 = vshrl.u32 %v1494_v13, 16  ;;  %v1477_v27 = vsel %vm201_vm8, 0, %v1476_v14  ;;  %v1495_v33 = vrot.slane %v1494_v13, 4  ;;  %v1511_v58 = vpack.i.b16 %v1494_v13, %v1475_v6  ;;  %v1895_v13 = vld [vmem:[%s2619_s9 + $0x8] sm:$0xff] }
 0x4e4   :  { %v1518_v46 = vshrl.u32 %v1477_v27, 16  ;;  %v1534_v38 = vunpack.c.l.b16 %v1508_v15  ;;  %1672 = vmatpush.bf16.msra.mxu2 %v1895_v13 }
 0x4e5   :  { %v1514_v43 = vpack.i.b16 %v1513_v1, %v1512_v20  ;;  %v1496_v40 = vsel %vm201_vm8, 0, %v1495_v33  ;;  %v1522_v34 = vunpack.c.l.b16 %v1511_v58 }
 0x4e6   :  { %v1517_v45 = vpack.i.b16 %v1496_v40, %v1477_v27  ;;  %v1519_v37 = vshrl.u32 %v1496_v40, 16 }
 0x4e7   :  { %v1525_v36 = vunpack.c.l.b16 %v1514_v43  ;;  %v1523_v23 = vpack.c.b16 %v1522_v34, %v1521_v44 }
 0x4e8   :  { %v1530_v48 = vunpack.c.l.b16 %v1517_v45  ;;  %v1520_v52 = vpack.i.b16 %v1519_v37, %v1518_v46  ;;  %1673 = vmatpush.bf16.msra.mxu2 %v1894_v57 }
 0x4e9   :  { %v1526_v53 = vpack.c.b16 %v1525_v36, %v1524_v32  ;;  %v1921_v32 = vld [vmem:[%s2617_s8] ss:$0 sm:$0xff] }
 0x4ea   :  { %v1531_v54 = vpack.c.b16 %v1530_v48, %v1529_v47  ;;  %v1535_v41 = vunpack.c.l.b16 %v1520_v52 }
 0x4eb   :  { %1527 = vrot.lane.b32.xlu2 %v1526_v53, %s1988_s23 }
 0x4ec   :  { %1532 = vrot.lane.b32.xlu0 %v1531_v54, %s1989_s24  ;;  %v1536_v22 = vpack.c.b16 %v1535_v41, %v1534_v38  ;;  %v1922_v54 = vld [vmem:[%s2618_s10] ss:$0 sm:$0xff] }
 0x4ee   :  { %1537 = vrot.lane.b32.xlu1 %v1536_v22, %s1990_s25  ;;  %v1903_v22 = vld [vmem:[%s2621_s11 + $0x38] sm:$0xff] }
 0x4ef   :  { %1793 = vmatpush.bf16.msra.mxu3 %v1903_v22 }
 0x545   :  { %v1528_v29 = vpop.permute.xlu2 %1527 }
 0x546   :  { %v1541_v51 = vsel %vm883_vm9, %v1523_v23, %v1528_v29  ;;  %v1902_v29 = vld [vmem:[%s2621_s11 + $0x30] sm:$0xff] }
 0x547   :  { %1794 = vmatpush.bf16.msra.mxu3 %v1902_v29 }
 0x55e   :  { %v1533_v56 = vpop.permute.xlu0 %1532 }
 0x55f   :  { %v1544_v59 = vsel %vm1542_vm11, %v1541_v51, %v1533_v56 }
 0x560   :  { %v1538_v31 = vpop.permute.xlu1 %1537 }
 0x561   :  { %v1547_v55 = vsel %vm1545_vm12, %v1544_v59, %v1538_v31 }
 0x562   :  { %1848 = vmatmul.msk.bf16.vlgmr.msra.gmra.mxu1 %vm50_vm0, %v1547_v55  ;;  %v1901_v55 = vld [vmem:[%s2621_s11 + $0x28] sm:$0xff] }
 0x563   :  { %1795 = vmatpush.bf16.msra.mxu3 %v1901_v55 }
 0x5df   :  { %v1579_v60 = vpop.f32.mrf.mxu1 }
 0x5e0   :  { %v1580_v4 = vadd.f32 %v1919_v0, %v1579_v60 }
 0x5e2   :  { %v2533_v9 = vadd.f32 %v1978_v5, %v1580_v4 }
 0x5e4   :  { %v1588_v30 = vsel %vm50_vm0, %v2533_v9, 0.0 }
 0x5e5   :  { %1589 = vadd.xlane.f32.xlu0 %v1588_v30  ;;  %v1900_v30 = vld [vmem:[%s2621_s11 + $0x20] sm:$0xff] }
 0x5e6   :  { %1796 = vmatpush.bf16.msra.mxu3 %v1900_v30 }
 0x5e7   :  { %v1581_v7 = vpop.f32.mrf.mxu1 }
 0x5e8   :  { %v1582_v61 = vadd.f32 %v1919_v0, %v1581_v7 }
 0x5ea   :  { %v2540_v62 = vadd.f32 %v1979_v63, %v1582_v61 }
 0x5ec   :  { %v1591_v28 = vsel %vm50_vm0, %v2540_v62, 0.0 }
 0x5ed   :  { %1592 = vadd.xlane.f32.xlu2 %v1591_v28  ;;  %v1899_v28 = vld [vmem:[%s2621_s11 + $0x18] sm:$0xff] }
 0x5ee   :  { %1797 = vmatpush.bf16.msra.mxu3 %v1899_v28 }
 0x658   :  { %v1590_v2 = vpop.xlane.xlu0 %1589 }
 0x659   :  { %v1594_v3 = vmul.f32 %v1590_v2, %v2070_v10 }
 0x65b   :  { %v1596_v8 = vsub.f32 %v2533_v9, %v1594_v3 }
 0x65d   :  { %v1598_v11 = vmul.f32 %v1596_v8, %v1596_v8 }
 0x65f   :  { %v1600_v19 = vsel %vm50_vm0, %v1598_v11, 0.0 }
 0x660   :  { %v1593_v12 = vpop.xlane.xlu2 %1592  ;;  %1601 = vadd.xlane.f32.xlu1 %v1600_v19 }
 0x661   :  { %v1595_v17 = vmul.f32 %v1593_v12, %v2070_v10 }
 0x663   :  { %v1597_v26 = vsub.f32 %v2540_v62, %v1595_v17  ;;  %v1897_v17 = vld [vmem:[%s2621_s11 + $0x8] sm:$0xff] }
 0x665   :  { %v1599_v18 = vmul.f32 %v1597_v26, %v1597_v26 }
 0x667   :  { %v1603_v6 = vsel %vm50_vm0, %v1599_v18, 0.0  ;;  %v1896_v18 = vld [vmem:[%s2621_s11] sm:$0xff] }
 0x668   :  { %1604 = vadd.xlane.f32.xlu0 %v1603_v6 }
 0x6d3   :  { %v1602_v49 = vpop.xlane.xlu1 %1601 }
 0x6d4   :  { %v1606_v21 = vmul.f32 %v1602_v49, %v2070_v10 }
 0x6d6   :  { %v1608_v50 = vadd.f32 1e-05, %v1606_v21 }
 0x6d8   :  { %1962 = vrsqrt.f32 %v1608_v50  ;;  %vm1616_vm14 = vweird.f32 %v1608_v50 }
 0x6db   :  { %v1605_v14 = vpop.xlane.xlu0 %1604 }
 0x6dc   :  { %v1607_v35 = vmul.f32 %v1605_v14, %v2070_v10  ;;  %v1920_v10 = vld [vmem:[%s2616_s7] ss:$0 sm:$0xff] }
 0x6de   :  { %v1963_v20 = vpop.eup %1962  ;;  %v1609_v25 = vadd.f32 1e-05, %v1607_v35 }
 0x6df   :  { %v1611_v1 = vmul.f32 %v1963_v20, %v1608_v50  ;;  %vm1617_vm13 = vweird.f32 %v1963_v20 }
 0x6e0   :  { %1964 = vrsqrt.f32 %v1609_v25  ;;  %vm1618_vm15 = vmor %vm1616_vm14, %vm1617_vm13  ;;  %vm1626_vm2 = vweird.f32 %v1609_v25 }
 0x6e1   :  { %v1612_v27 = vmul.f32 %v1963_v20, %v1611_v1  ;;  %v1991_v1 = vmov 1065369472  }
 0x6e3   :  { %v1613_v33 = vmul.f32 0.5, %v1612_v27  ;;  %v1704_v27 = vunpack.c.h.bf16 %v1991_v1 }
 0x6e5   :  { %v1614_v58 = vsub.f32 1.5, %v1613_v33  ;;  %v1705_v33 = vunpack.c.l.bf16 %v1991_v1 }
 0x6e6   :  { %v1965_v24 = vpop.eup %1964 }
 0x6e7   :  { %v1615_v39 = vmul.f32 %v1963_v20, %v1614_v58  ;;  %v1621_v43 = vmul.f32 %v1965_v24, %v1609_v25  ;;  %vm1627_vm1 = vweird.f32 %v1965_v24 }
 0x6e8   :  { %vm1628_vm3 = vmor %vm1626_vm2, %vm1627_vm1 }
 0x6e9   :  { %v1622_v40 = vmul.f32 %v1965_v24, %v1621_v43  ;;  %v1619_v44 = vsel %vm1618_vm15, %v1963_v20, %v1615_v39 }
 0x6ea   :  { %v1630_v15 = vmul.f32 %v1619_v44, %v1596_v8  ;;  %v1898_v8 = vld [vmem:[%s2621_s11 + $0x10] sm:$0xff] }
 0x6eb   :  { %v1623_v34 = vmul.f32 0.5, %v1622_v40  ;;  %1798 = vmatpush.bf16.msra.mxu3 %v1898_v8 }
 0x6ec   :  { %v1635_v36 = vmul.f32 %v1920_v10, %v1630_v15 }
 0x6ed   :  { %v1624_v45 = vsub.f32 1.5, %v1623_v34 }
 0x6ee   :  { %v1640_v48 = vadd.f32 %v1921_v32, %v1635_v36 }
 0x6ef   :  { %v1625_v46 = vmul.f32 %v1965_v24, %v1624_v45  ;;  %1799 = vmatpush.bf16.msra.mxu3 %v1897_v17 }
 0x6f1   :  { %v1629_v37 = vsel %vm1628_vm3, %v1965_v24, %v1625_v46 }
 0x6f2   :  { %v1631_v23 = vmul.f32 %v1629_v37, %v1597_v26 }
 0x6f3   :  { %1800 = vmatpush.bf16.msra.mxu3 %v1896_v18 }
 0x6f4   :  { %v1636_v47 = vmul.f32 %v1920_v10, %v1631_v23 }
 0x6f6   :  { %v1641_v52 = vadd.f32 %v1921_v32, %v1636_v47 }
 0x6f8   :  { %v1642_v53 = vpack.c.bf16 %v1641_v52, %v1640_v48  ;;  %v1923_v48 = vld [vmem:[%s2620_s12] ss:$0 sm:$0xff] }
 0x6fa   :  { %1857 = vmatmul.msk.bf16.vlgmr.msra.gmra.mxu2 %vm50_vm0, %v1642_v53 }
 0x77d   :  { %v1675_v38 = vpop.f32.mrf.mxu2 }
 0x77e   :  { %v1676_v41 = vadd.f32 %v1922_v54, %v1675_v38 }
 0x780   :  { %v1680_v42 = vpack.c.bf16 %v1676_v41, %v1676_v41 }
 0x782   :  { %v2571_v16 = vunpack.c.l.bf16 %v1680_v42 }
 0x784   :  { %v1684_v51 = vmul.f32 1.703125, %v2571_v16 }
 0x785   :  { %v1677_v56 = vpop.f32.mrf.mxu2 }
 0x786   :  { %v1686_v59 = vpack.c.bf16 %v1684_v51, %v1684_v51  ;;  %v1678_v31 = vadd.f32 %v1922_v54, %v1677_v56 }
 0x788   :  { %v1688_v0 = vxor.u32 2147516416, %v1686_v59  ;;  %v1681_v60 = vpack.c.bf16 %v1678_v31, %v1678_v31 }
 0x78a   :  { %v1690_v4 = vunpack.c.l.bf16 %v1688_v0  ;;  %v1683_v5 = vunpack.c.l.bf16 %v1681_v60 }
 0x78c   :  { %v1692_v7 = vmul.f32 1.442695, %v1690_v4  ;;  %v1685_v61 = vmul.f32 1.703125, %v1683_v5 }
 0x78e   :  { %1966 = vpow2.f32 %v1692_v7  ;;  %v1687_v63 = vpack.c.bf16 %v1685_v61, %v1685_v61 }
 0x790   :  { %v1689_v2 = vxor.u32 2147516416, %v1687_v63 }
 0x792   :  { %v1691_v3 = vunpack.c.l.bf16 %v1689_v2 }
 0x794   :  { %v1967_v11 = vpop.eup %1966  ;;  %v1694_v19 = vmul.f32 1.442695, %v1691_v3 }
 0x795   :  { %v1696_v12 = vpack.c.bf16 %v1967_v11, %v1967_v11 }
 0x796   :  { %1968 = vpow2.f32 %v1694_v19 }
 0x797   :  { %v1698_v26 = vunpack.c.l.bf16 %v1696_v12 }
 0x799   :  { %v1700_v6 = vadd.f32 1.0, %v1698_v26 }
 0x79b   :  { %v1702_v49 = vpack.c.bf16 %v1700_v6, %v1700_v6 }
 0x79c   :  { %v1969_v21 = vpop.eup %1968 }
 0x79d   :  { %v1706_v50 = vunpack.c.h.bf16 %v1702_v49  ;;  %v1707_v13 = vunpack.c.l.bf16 %v1702_v49  ;;  %v1697_v57 = vpack.c.bf16 %v1969_v21, %v1969_v21 }
 0x79f   :  { %1970 = vrcp.f32 %v1706_v50  ;;  %v1699_v14 = vunpack.c.l.bf16 %v1697_v57 }
 0x7a0   :  { %1972 = vrcp.f32 %v1707_v13 }
 0x7a1   :  { %v1701_v35 = vadd.f32 1.0, %v1699_v14 }
 0x7a3   :  { %v1703_v20 = vpack.c.bf16 %v1701_v35, %v1701_v35 }
 0x7a5   :  { %v1971_v25 = vpop.eup %1970  ;;  %v1713_v58 = vunpack.c.h.bf16 %v1703_v20  ;;  %v1714_v24 = vunpack.c.l.bf16 %v1703_v20 }
 0x7a6   :  { %v1973_v39 = vpop.eup %1972  ;;  %v1709_v43 = vmul.f32 %v1971_v25, %v1704_v27 }
 0x7a7   :  { %1974 = vrcp.f32 %v1713_v58  ;;  %v1711_v40 = vmul.f32 %v1973_v39, %v1705_v33 }
 0x7a8   :  { %1976 = vrcp.f32 %v1714_v24 }
 0x7a9   :  { %v1712_v34 = vpack.c.bf16 %v1709_v43, %v1711_v40 }
 0x7ab   :  { %v1720_v46 = vunpack.c.l.bf16 %v1712_v34 }
 0x7ad   :  { %v1975_v44 = vpop.eup %1974  ;;  %v1722_v36 = vmul.f32 %v1720_v46, %v2571_v16 }
 0x7ae   :  { %v1977_v45 = vpop.eup %1976  ;;  %v1716_v10 = vmul.f32 %v1975_v44, %v1704_v27 }
 0x7af   :  { %v1718_v15 = vmul.f32 %v1977_v45, %v1705_v33 }
 0x7b1   :  { %v1719_v37 = vpack.c.bf16 %v1716_v10, %v1718_v15 }
 0x7b3   :  { %v1721_v32 = vunpack.c.l.bf16 %v1719_v37 }
 0x7b5   :  { %v1723_v23 = vmul.f32 %v1721_v32, %v1683_v5 }
 0x7b7   :  { %v1724_v47 = vpack.c.bf16 %v1723_v23, %v1722_v36 }
 0x7b9   :  { %1801 = vmatmul.bf16.vlgmr.msra.gmra.mxu3 %v1724_v47 }
 0x83c   :  { %v1802_v52 = vpop.f32.mrf.mxu3 }
 0x83d   :  { %v1803_v53 = vadd.f32 %v1923_v48, %v1802_v52 }
 0x83f   :  { %v1807_v54 = vadd.f32 %v1803_v53, %v2533_v9 }
 0x841   :  { %1809 = vst.msk [vmem:[%s2622_s13] sm:$0xff] %vm50_vm0, %v1807_v54 }
 0x844   :  { %v1804_v38 = vpop.f32.mrf.mxu3 }
 0x845   :  { %v1805_v41 = vadd.f32 %v1923_v48, %v1804_v38 }
 0x847   :  { %v1808_v22 = vadd.f32 %v1805_v41, %v2540_v62 }
 0x849   :  { %1810 = vst.msk [vmem:[%s2622_s13 + $0x8] sm:$0xff] %vm50_vm0, %v1808_v22 }

</bundles_post_ra>
